<compile_context>
chip_gen: v7x
topology: tpu7x:2x2x1
jax: 0.10.0
libtpu: 0.0.40
codegen_flags: <defaults>
</compile_context>

<pallas_src>
import functools

import numpy as np
import jax
import jax.numpy as jnp
from jax import lax
from jax.experimental import pallas as pl
from jax.experimental.pallas import tpu as pltpu


_LAYER_CFG = [
    # name, kernel, stride, pad
    ("conv1", 4, 2, 1),
    ("conv2", 3, 2, 1),
    ("conv3", 3, 2, 1),
    ("conv4", 3, 2, 1),
    ("conv5", 3, 2, 1),
]

_CONV_SHAPES = {
    "conv1": (8, 1, 4, 4),
    "conv2": (16, 8, 3, 3),
    "conv3": (8, 16, 3, 3),
    "conv4": (4, 8, 3, 3),
    "conv5": (1, 4, 3, 3),
}


# ---------------------------------------------------------------------------
# Fused kernel: conv1..conv5 + BatchNorm (batch statistics) + LeakyReLU/Sigmoid
# ---------------------------------------------------------------------------
def _discriminator_kernel(p1_ref, w1_ref, b1_ref, wcat_ref,
                          s2_ref, s3_ref, s4_ref, s5_ref, gb_ref,
                          o_ref, *, eps, meta):
    f32 = jnp.float32

    def leaky(y):
        return jnp.where(y > 0, y, 0.2 * y)           # LeakyReLU(0.2)

    def conv_bn(x, s_ref, c_in, c_out, taps, wc_off, gb_off):
        # Conv as  Y = sum_t S_t @ (X @ W_cat)[:, t*C_out:(t+1)*C_out]
        # (weight matmul hoisted out of the tap loop -> taps+1 dots/layer).
        wcat = wcat_ref[0:c_in, wc_off:wc_off + taps * c_out]
        p = jnp.dot(x, wcat, preferred_element_type=f32)
        acc = None
        for t in range(taps):                          # static unroll
            y = jnp.dot(s_ref[t].astype(f32),          # bf16 0/1 -> f32, exact
                        p[:, t * c_out:(t + 1) * c_out],
                        preferred_element_type=f32)
            acc = y if acc is None else acc + y
        # Conv bias omitted: a per-channel constant shift is exactly cancelled
        # by the batch-statistics BatchNorm that immediately follows.
        mean = jnp.mean(acc, axis=0, keepdims=True)
        var = jnp.mean(jnp.square(acc - mean), axis=0, keepdims=True)
        gamma = gb_ref[0:1, gb_off:gb_off + c_out]
        beta = gb_ref[1:2, gb_off:gb_off + c_out]
        return (acc - mean) * lax.rsqrt(var + eps) * gamma + beta

    # conv1 + bias + LeakyReLU (the reference forward does NOT apply norm1).
    h = jnp.dot(p1_ref[...], w1_ref[...], preferred_element_type=f32)
    h = leaky(h + b1_ref[...])

    s_refs = (s2_ref, s3_ref, s4_ref, s5_ref)
    n_layers = len(meta)
    for i in range(n_layers):
        c_in, c_out, taps, wc_off, gb_off = meta[i]
        h = conv_bn(h, s_refs[i], c_in, c_out, taps, wc_off, gb_off)
        if i < n_layers - 1:                           # conv2..conv4
            h = leaky(h)
    # Sigmoid via the exact tanh identity (single EUP transcendental).
    o_ref[...] = 0.5 * (jnp.tanh(0.5 * h) + 1.0)


# ---------------------------------------------------------------------------
# Host-side (one-time) packing helpers
# ---------------------------------------------------------------------------
@functools.lru_cache(maxsize=None)
def _selection_matrices(N, H, W, k, s, p):
    """0/1 row-selection matrices S_t so (S_t @ X)[r_out] = X[input row of tap
    t for output pixel r_out] (all-zero row == zero padding).  Rows ordered
    (n, h, w); channels stay on the lane axis.  All-zero taps are dropped.
    Pure geometry -> computed once with numpy and cached."""
    Ho = (H + 2 * p - k) // s + 1
    Wo = (W + 2 * p - k) // s + 1
    S = np.zeros((k * k, N * Ho * Wo, N * H * W), np.float32)
    for kh in range(k):
        for kw in range(k):
            t = kh * k + kw
            for n in range(N):
                for ho in range(Ho):
                    hi = ho * s + kh - p
                    if not 0 <= hi < H:
                        continue
                    for wo in range(Wo):
                        wi = wo * s + kw - p
                        if not 0 <= wi < W:
                            continue
                        S[t, (n * Ho + ho) * Wo + wo, (n * H + hi) * W + wi] = 1.0
    nz = tuple(t for t in range(k * k) if S[t].any())
    return S[np.asarray(nz)], nz, Ho, Wo


@functools.lru_cache(maxsize=None)
def _conv1_gather_idx(H, W, k, s, p):
    """Static flat indices into the zero-padded image for conv1's im2col."""
    Ho = (H + 2 * p - k) // s + 1
    Wo = (W + 2 * p - k) // s + 1
    Wp = W + 2 * p
    idx = np.empty((Ho, Wo, k, k), np.int32)
    for ho in range(Ho):
        for wo in range(Wo):
            for kh in range(k):
                for kw in range(k):
                    idx[ho, wo, kh, kw] = (ho * s + kh) * Wp + (wo * s + kw)
    return idx.reshape(-1), Ho, Wo


def init_params(key):
    params = {}
    for name, shp in _CONV_SHAPES.items():
        key, k1, k2 = jax.random.split(key, 3)
        fan_in = shp[1] * shp[2] * shp[3]
        w = jax.random.normal(k1, shp, jnp.float32) / jnp.sqrt(float(fan_in))
        b = jax.random.normal(k2, (shp[0],), jnp.float32) * 0.01
        gamma = jnp.ones((shp[0],), jnp.float32)       # BatchNorm default init
        beta = jnp.zeros((shp[0],), jnp.float32)
        params[name] = (w, b, gamma, beta)
    return params


def pack_inputs(params, batch, height, width):
    """One-time packing of weights + constant selection matrices into the
    kernel operand layout (runs once, outside the jitted hot path)."""
    w1, b1, _, _ = params["conv1"]
    _, k1, s1, pd1 = _LAYER_CFG[0]
    cur_h = (height + 2 * pd1 - k1) // s1 + 1
    cur_w = (width + 2 * pd1 - k1) // s1 + 1
    packed = {
        "w1": w1.reshape(w1.shape[0], -1).T.astype(jnp.float32),     # (16, 8)
        "b1": b1.reshape(1, -1).astype(jnp.float32),                 # (1, 8)
    }

    wcats, gammas, betas, s_mats = [], [], [], []
    max_cin = max(_CONV_SHAPES[name][1] for name, *_ in _LAYER_CFG[1:])
    for name, k, s, p in _LAYER_CFG[1:]:
        w, _, g, be = params[name]
        c_out, c_in = w.shape[0], w.shape[1]
        S, nz, cur_h, cur_w = _selection_matrices(batch, cur_h, cur_w, k, s, p)
        s_mats.append(jnp.asarray(S, dtype=jnp.bfloat16))            # exact 0/1
        # Per-tap weights W_t (C_in, C_out), concatenated along columns into
        # W_cat and padded to a shared row count so all layers use one buffer.
        w_taps = jnp.transpose(w, (2, 3, 1, 0)).reshape(k * k, c_in, c_out)
        wcat = jnp.concatenate([w_taps[t] for t in nz], axis=1)      # (C_in, T*C_out)
        wcats.append(jnp.pad(wcat, ((0, max_cin - c_in), (0, 0))))
        gammas.append(g)
        betas.append(be)
    assert cur_h == 1 and cur_w == 1, "expects 16x16 input (reduces to 1x1)"

    packed["wcat"] = jnp.concatenate(wcats, axis=1).astype(jnp.float32)   # (16, 233)
    packed["gb"] = jnp.stack([jnp.concatenate(gammas),
                              jnp.concatenate(betas)]).astype(jnp.float32)  # (2, 29)
    packed["s2"], packed["s3"], packed["s4"], packed["s5"] = s_mats
    return packed


def discriminator_forward(x, packed):
    """x: (N, 1, H, W) -> (N,) probabilities.  Single fused pallas_call."""
    n, c_in, height, width = x.shape
    assert c_in == 1
    x = x.astype(jnp.float32).reshape(n, height, width)

    # conv1 im2col: pad + one static gather (indices are a numpy constant).
    _, k1, s1, pd1 = _LAYER_CFG[0]
    idx, ho1, wo1 = _conv1_gather_idx(height, width, k1, s1, pd1)
    xp = jnp.pad(x, ((0, 0), (pd1, pd1), (pd1, pd1)))
    patches1 = xp.reshape(n, -1)[:, idx].reshape(n * ho1 * wo1, k1 * k1)

    # Static per-layer metadata derived from the packed operand shapes.
    s_keys = ("s2", "s3", "s4", "s5")
    c_ins = tuple(_CONV_SHAPES[name][1] for name, *_ in _LAYER_CFG[1:])
    c_outs = tuple(_CONV_SHAPES[name][0] for name, *_ in _LAYER_CFG[1:])
    meta, wc_off, gb_off = [], 0, 0
    for key, ci, co in zip(s_keys, c_ins, c_outs):
        taps = packed[key].shape[0]
        meta.append((ci, co, taps, wc_off, gb_off))
        wc_off += taps * co
        gb_off += co
    meta = tuple(meta)
    assert wc_off == packed["wcat"].shape[1]
    assert gb_off == packed["gb"].shape[1]

    # Single block, no grid: ~120 KB total, fully VMEM-resident on v5e/v6e/v7x.
    # For large N, add a "parallel" row grid so v7x's two TensorCores split rows.
    out = pl.pallas_call(
        functools.partial(_discriminator_kernel, eps=1e-5, meta=meta),
        out_shape=jax.ShapeDtypeStruct((n, 1), jnp.float32),
        in_specs=[pl.BlockSpec(memory_space=pltpu.MemorySpace.VMEM)] * 9,
        out_specs=pl.BlockSpec(memory_space=pltpu.MemorySpace.VMEM),
    )(patches1, packed["w1"], packed["b1"], packed["wcat"],
      packed["s2"], packed["s3"], packed["s4"], packed["s5"], packed["gb"])
    # Matches x.reshape(x.shape[0]) in the reference forward.
    return out.reshape(n)


if __name__ == "__main__":
    key = jax.random.PRNGKey(0)
    kp, kx = jax.random.split(key)
    params = init_params(kp)
    # image_nc=1; a 16x16 input reduces 16->8->4->2->1->1 so the final
    # reshape-to-(N,) in the reference forward is valid.
    x = jax.random.normal(kx, (2, 1, 16, 16), jnp.float32)

    packed = pack_inputs(params, batch=2, height=16, width=16)
    fwd = jax.jit(discriminator_forward)
    out = jax.block_until_ready(fwd(x, packed))
    assert out.shape == (2,)
    assert bool(jnp.all(jnp.isfinite(out)))
    assert bool(jnp.all((out >= 0.0) & (out <= 1.0)))
    print("KERNEL_OK")
</pallas_src>

<mosaic_0001>
module attributes {stable_mosaic.version = 11 : i64} {
  func.func @_discriminator_kernel(%arg0: memref<128x16xf32, #tpu.memory_space<vmem>>, %arg1: memref<16x8xf32, #tpu.memory_space<vmem>>, %arg2: memref<1x8xf32, #tpu.memory_space<vmem>>, %arg3: memref<16x233xf32, #tpu.memory_space<vmem>>, %arg4: memref<9x32x128xbf16, #tpu.memory_space<vmem>>, %arg5: memref<9x8x32xbf16, #tpu.memory_space<vmem>>, %arg6: memref<4x2x8xbf16, #tpu.memory_space<vmem>>, %arg7: memref<1x2x2xbf16, #tpu.memory_space<vmem>>, %arg8: memref<2x29xf32, #tpu.memory_space<vmem>>, %arg9: memref<2x1xf32, #tpu.memory_space<vmem>>) attributes {dimension_semantics = [], scalar_prefetch = 0 : i64, scratch_operands = 0 : i64, tpu.core_type = #tpu.core_type<tc>} {
    %c0 = arith.constant 0 : index
    %c0_0 = arith.constant 0 : index
    %0 = vector.load %arg0[%c0, %c0_0] : memref<128x16xf32, #tpu.memory_space<vmem>>, vector<128x16xf32>
    %c0_1 = arith.constant 0 : index
    %c0_2 = arith.constant 0 : index
    %1 = vector.load %arg1[%c0_1, %c0_2] : memref<16x8xf32, #tpu.memory_space<vmem>>, vector<16x8xf32>
    %cst = arith.constant dense<0.000000e+00> : vector<128x8xf32>
    %2 = tpu.matmul %0, %1, %cst {dimension_numbers = #tpu.dot_dimension_numbers<[1], [0], [0], [1], [0, 0, 1, 1], [], []>} : vector<128x16xf32>, vector<16x8xf32>, vector<128x8xf32> -> vector<128x8xf32>
    %c0_3 = arith.constant 0 : index
    %c0_4 = arith.constant 0 : index
    %3 = vector.load %arg2[%c0_3, %c0_4] : memref<1x8xf32, #tpu.memory_space<vmem>>, vector<1x8xf32>
    %4 = vector.broadcast %3 : vector<1x8xf32> to vector<128x8xf32>
    %5 = arith.addf %2, %4 : vector<128x8xf32>
    %cst_5 = arith.constant 0.000000e+00 : f32
    %6 = vector.broadcast %cst_5 : f32 to vector<128x8xf32>
    %7 = arith.cmpf ogt, %5, %6 : vector<128x8xf32>
    %cst_6 = arith.constant 2.000000e-01 : f32
    %8 = vector.broadcast %cst_6 : f32 to vector<128x8xf32>
    %9 = arith.mulf %8, %5 : vector<128x8xf32>
    %10 = arith.select %7, %5, %9 : vector<128x8xi1>, vector<128x8xf32>
    %c0_7 = arith.constant 0 : index
    %c0_8 = arith.constant 0 : index
    %11 = vector.load %arg3[%c0_7, %c0_8] : memref<16x233xf32, #tpu.memory_space<vmem>>, vector<8x144xf32>
    %cst_9 = arith.constant dense<0.000000e+00> : vector<128x144xf32>
    %12 = tpu.matmul %10, %11, %cst_9 {dimension_numbers = #tpu.dot_dimension_numbers<[1], [0], [0], [1], [0, 0, 1, 1], [], []>} : vector<128x8xf32>, vector<8x144xf32>, vector<128x144xf32> -> vector<128x144xf32>
    %c0_10 = arith.constant 0 : index
    %c0_11 = arith.constant 0 : index
    %c0_12 = arith.constant 0 : index
    %13 = vector.load %arg4[%c0_10, %c0_11, %c0_12] : memref<9x32x128xbf16, #tpu.memory_space<vmem>>, vector<1x32x128xbf16>
    %14 = vector.shape_cast %13 : vector<1x32x128xbf16> to vector<32x128xbf16>
    %15 = arith.extf %14 : vector<32x128xbf16> to vector<32x128xf32>
    %16 = vector.extract_strided_slice %12 {offsets = [0, 0], sizes = [128, 16], strides = [1, 1]} : vector<128x144xf32> to vector<128x16xf32>
    %cst_13 = arith.constant dense<0.000000e+00> : vector<32x16xf32>
    %17 = tpu.matmul %15, %16, %cst_13 {dimension_numbers = #tpu.dot_dimension_numbers<[1], [0], [0], [1], [0, 0, 1, 1], [], []>} : vector<32x128xf32>, vector<128x16xf32>, vector<32x16xf32> -> vector<32x16xf32>
    %c1 = arith.constant 1 : index
    %c0_14 = arith.constant 0 : index
    %c0_15 = arith.constant 0 : index
    %18 = vector.load %arg4[%c1, %c0_14, %c0_15] : memref<9x32x128xbf16, #tpu.memory_space<vmem>>, vector<1x32x128xbf16>
    %19 = vector.shape_cast %18 : vector<1x32x128xbf16> to vector<32x128xbf16>
    %20 = arith.extf %19 : vector<32x128xbf16> to vector<32x128xf32>
    %21 = vector.extract_strided_slice %12 {offsets = [0, 16], sizes = [128, 16], strides = [1, 1]} : vector<128x144xf32> to vector<128x16xf32>
    %cst_16 = arith.constant dense<0.000000e+00> : vector<32x16xf32>
    %22 = tpu.matmul %20, %21, %cst_16 {dimension_numbers = #tpu.dot_dimension_numbers<[1], [0], [0], [1], [0, 0, 1, 1], [], []>} : vector<32x128xf32>, vector<128x16xf32>, vector<32x16xf32> -> vector<32x16xf32>
    %23 = arith.addf %17, %22 : vector<32x16xf32>
    %c2 = arith.constant 2 : index
    %c0_17 = arith.constant 0 : index
    %c0_18 = arith.constant 0 : index
    %24 = vector.load %arg4[%c2, %c0_17, %c0_18] : memref<9x32x128xbf16, #tpu.memory_space<vmem>>, vector<1x32x128xbf16>
    %25 = vector.shape_cast %24 : vector<1x32x128xbf16> to vector<32x128xbf16>
    %26 = arith.extf %25 : vector<32x128xbf16> to vector<32x128xf32>
    %27 = vector.extract_strided_slice %12 {offsets = [0, 32], sizes = [128, 16], strides = [1, 1]} : vector<128x144xf32> to vector<128x16xf32>
    %cst_19 = arith.constant dense<0.000000e+00> : vector<32x16xf32>
    %28 = tpu.matmul %26, %27, %cst_19 {dimension_numbers = #tpu.dot_dimension_numbers<[1], [0], [0], [1], [0, 0, 1, 1], [], []>} : vector<32x128xf32>, vector<128x16xf32>, vector<32x16xf32> -> vector<32x16xf32>
    %29 = arith.addf %23, %28 : vector<32x16xf32>
    %c3 = arith.constant 3 : index
    %c0_20 = arith.constant 0 : index
    %c0_21 = arith.constant 0 : index
    %30 = vector.load %arg4[%c3, %c0_20, %c0_21] : memref<9x32x128xbf16, #tpu.memory_space<vmem>>, vector<1x32x128xbf16>
    %31 = vector.shape_cast %30 : vector<1x32x128xbf16> to vector<32x128xbf16>
    %32 = arith.extf %31 : vector<32x128xbf16> to vector<32x128xf32>
    %33 = vector.extract_strided_slice %12 {offsets = [0, 48], sizes = [128, 16], strides = [1, 1]} : vector<128x144xf32> to vector<128x16xf32>
    %cst_22 = arith.constant dense<0.000000e+00> : vector<32x16xf32>
    %34 = tpu.matmul %32, %33, %cst_22 {dimension_numbers = #tpu.dot_dimension_numbers<[1], [0], [0], [1], [0, 0, 1, 1], [], []>} : vector<32x128xf32>, vector<128x16xf32>, vector<32x16xf32> -> vector<32x16xf32>
    %35 = arith.addf %29, %34 : vector<32x16xf32>
    %c4 = arith.constant 4 : index
    %c0_23 = arith.constant 0 : index
    %c0_24 = arith.constant 0 : index
    %36 = vector.load %arg4[%c4, %c0_23, %c0_24] : memref<9x32x128xbf16, #tpu.memory_space<vmem>>, vector<1x32x128xbf16>
    %37 = vector.shape_cast %36 : vector<1x32x128xbf16> to vector<32x128xbf16>
    %38 = arith.extf %37 : vector<32x128xbf16> to vector<32x128xf32>
    %39 = vector.extract_strided_slice %12 {offsets = [0, 64], sizes = [128, 16], strides = [1, 1]} : vector<128x144xf32> to vector<128x16xf32>
    %cst_25 = arith.constant dense<0.000000e+00> : vector<32x16xf32>
    %40 = tpu.matmul %38, %39, %cst_25 {dimension_numbers = #tpu.dot_dimension_numbers<[1], [0], [0], [1], [0, 0, 1, 1], [], []>} : vector<32x128xf32>, vector<128x16xf32>, vector<32x16xf32> -> vector<32x16xf32>
    %41 = arith.addf %35, %40 : vector<32x16xf32>
    %c5 = arith.constant 5 : index
    %c0_26 = arith.constant 0 : index
    %c0_27 = arith.constant 0 : index
    %42 = vector.load %arg4[%c5, %c0_26, %c0_27] : memref<9x32x128xbf16, #tpu.memory_space<vmem>>, vector<1x32x128xbf16>
    %43 = vector.shape_cast %42 : vector<1x32x128xbf16> to vector<32x128xbf16>
    %44 = arith.extf %43 : vector<32x128xbf16> to vector<32x128xf32>
    %45 = vector.extract_strided_slice %12 {offsets = [0, 80], sizes = [128, 16], strides = [1, 1]} : vector<128x144xf32> to vector<128x16xf32>
    %cst_28 = arith.constant dense<0.000000e+00> : vector<32x16xf32>
    %46 = tpu.matmul %44, %45, %cst_28 {dimension_numbers = #tpu.dot_dimension_numbers<[1], [0], [0], [1], [0, 0, 1, 1], [], []>} : vector<32x128xf32>, vector<128x16xf32>, vector<32x16xf32> -> vector<32x16xf32>
    %47 = arith.addf %41, %46 : vector<32x16xf32>
    %c6 = arith.constant 6 : index
    %c0_29 = arith.constant 0 : index
    %c0_30 = arith.constant 0 : index
    %48 = vector.load %arg4[%c6, %c0_29, %c0_30] : memref<9x32x128xbf16, #tpu.memory_space<vmem>>, vector<1x32x128xbf16>
    %49 = vector.shape_cast %48 : vector<1x32x128xbf16> to vector<32x128xbf16>
    %50 = arith.extf %49 : vector<32x128xbf16> to vector<32x128xf32>
    %51 = vector.extract_strided_slice %12 {offsets = [0, 96], sizes = [128, 16], strides = [1, 1]} : vector<128x144xf32> to vector<128x16xf32>
    %cst_31 = arith.constant dense<0.000000e+00> : vector<32x16xf32>
    %52 = tpu.matmul %50, %51, %cst_31 {dimension_numbers = #tpu.dot_dimension_numbers<[1], [0], [0], [1], [0, 0, 1, 1], [], []>} : vector<32x128xf32>, vector<128x16xf32>, vector<32x16xf32> -> vector<32x16xf32>
    %53 = arith.addf %47, %52 : vector<32x16xf32>
    %c7 = arith.constant 7 : index
    %c0_32 = arith.constant 0 : index
    %c0_33 = arith.constant 0 : index
    %54 = vector.load %arg4[%c7, %c0_32, %c0_33] : memref<9x32x128xbf16, #tpu.memory_space<vmem>>, vector<1x32x128xbf16>
    %55 = vector.shape_cast %54 : vector<1x32x128xbf16> to vector<32x128xbf16>
    %56 = arith.extf %55 : vector<32x128xbf16> to vector<32x128xf32>
    %57 = vector.extract_strided_slice %12 {offsets = [0, 112], sizes = [128, 16], strides = [1, 1]} : vector<128x144xf32> to vector<128x16xf32>
    %cst_34 = arith.constant dense<0.000000e+00> : vector<32x16xf32>
    %58 = tpu.matmul %56, %57, %cst_34 {dimension_numbers = #tpu.dot_dimension_numbers<[1], [0], [0], [1], [0, 0, 1, 1], [], []>} : vector<32x128xf32>, vector<128x16xf32>, vector<32x16xf32> -> vector<32x16xf32>
    %59 = arith.addf %53, %58 : vector<32x16xf32>
    %c8 = arith.constant 8 : index
    %c0_35 = arith.constant 0 : index
    %c0_36 = arith.constant 0 : index
    %60 = vector.load %arg4[%c8, %c0_35, %c0_36] : memref<9x32x128xbf16, #tpu.memory_space<vmem>>, vector<1x32x128xbf16>
    %61 = vector.shape_cast %60 : vector<1x32x128xbf16> to vector<32x128xbf16>
    %62 = arith.extf %61 : vector<32x128xbf16> to vector<32x128xf32>
    %63 = vector.extract_strided_slice %12 {offsets = [0, 128], sizes = [128, 16], strides = [1, 1]} : vector<128x144xf32> to vector<128x16xf32>
    %cst_37 = arith.constant dense<0.000000e+00> : vector<32x16xf32>
    %64 = tpu.matmul %62, %63, %cst_37 {dimension_numbers = #tpu.dot_dimension_numbers<[1], [0], [0], [1], [0, 0, 1, 1], [], []>} : vector<32x128xf32>, vector<128x16xf32>, vector<32x16xf32> -> vector<32x16xf32>
    %65 = arith.addf %59, %64 : vector<32x16xf32>
    %cst_38 = arith.constant dense<0.000000e+00> : vector<16xf32>
    %66 = vector.multi_reduction <add>, %65, %cst_38 [0] : vector<32x16xf32> to vector<16xf32>
    %67 = vector.shape_cast %66 : vector<16xf32> to vector<1x16xf32>
    %cst_39 = arith.constant 3.200000e+01 : f32
    %68 = vector.broadcast %cst_39 : f32 to vector<1x16xf32>
    %69 = arith.divf %67, %68 : vector<1x16xf32>
    %70 = vector.broadcast %69 : vector<1x16xf32> to vector<32x16xf32>
    %71 = arith.subf %65, %70 : vector<32x16xf32>
    %72 = arith.mulf %71, %71 : vector<32x16xf32>
    %cst_40 = arith.constant dense<0.000000e+00> : vector<16xf32>
    %73 = vector.multi_reduction <add>, %72, %cst_40 [0] : vector<32x16xf32> to vector<16xf32>
    %74 = vector.shape_cast %73 : vector<16xf32> to vector<1x16xf32>
    %cst_41 = arith.constant 3.200000e+01 : f32
    %75 = vector.broadcast %cst_41 : f32 to vector<1x16xf32>
    %76 = arith.divf %74, %75 : vector<1x16xf32>
    %c0_42 = arith.constant 0 : index
    %c0_43 = arith.constant 0 : index
    %77 = vector.load %arg8[%c0_42, %c0_43] : memref<2x29xf32, #tpu.memory_space<vmem>>, vector<1x16xf32>
    %c1_44 = arith.constant 1 : index
    %c0_45 = arith.constant 0 : index
    %78 = vector.load %arg8[%c1_44, %c0_45] : memref<2x29xf32, #tpu.memory_space<vmem>>, vector<1x16xf32>
    %79 = vector.broadcast %69 : vector<1x16xf32> to vector<32x16xf32>
    %80 = arith.subf %65, %79 : vector<32x16xf32>
    %cst_46 = arith.constant 9.99999974E-6 : f32
    %81 = vector.broadcast %cst_46 : f32 to vector<1x16xf32>
    %82 = arith.addf %76, %81 : vector<1x16xf32>
    %83 = math.rsqrt %82 : vector<1x16xf32>
    %84 = vector.broadcast %83 : vector<1x16xf32> to vector<32x16xf32>
    %85 = arith.mulf %80, %84 : vector<32x16xf32>
    %86 = vector.broadcast %77 : vector<1x16xf32> to vector<32x16xf32>
    %87 = arith.mulf %85, %86 : vector<32x16xf32>
    %88 = vector.broadcast %78 : vector<1x16xf32> to vector<32x16xf32>
    %89 = arith.addf %87, %88 : vector<32x16xf32>
    %cst_47 = arith.constant 0.000000e+00 : f32
    %90 = vector.broadcast %cst_47 : f32 to vector<32x16xf32>
    %91 = arith.cmpf ogt, %89, %90 : vector<32x16xf32>
    %cst_48 = arith.constant 2.000000e-01 : f32
    %92 = vector.broadcast %cst_48 : f32 to vector<32x16xf32>
    %93 = arith.mulf %92, %89 : vector<32x16xf32>
    %94 = arith.select %91, %89, %93 : vector<32x16xi1>, vector<32x16xf32>
    %c0_49 = arith.constant 0 : index
    %c144 = arith.constant 144 : index
    %95 = vector.load %arg3[%c0_49, %c144] : memref<16x233xf32, #tpu.memory_space<vmem>>, vector<16x72xf32>
    %cst_50 = arith.constant dense<0.000000e+00> : vector<32x72xf32>
    %96 = tpu.matmul %94, %95, %cst_50 {dimension_numbers = #tpu.dot_dimension_numbers<[1], [0], [0], [1], [0, 0, 1, 1], [], []>} : vector<32x16xf32>, vector<16x72xf32>, vector<32x72xf32> -> vector<32x72xf32>
    %c0_51 = arith.constant 0 : index
    %c0_52 = arith.constant 0 : index
    %c0_53 = arith.constant 0 : index
    %97 = vector.load %arg5[%c0_51, %c0_52, %c0_53] : memref<9x8x32xbf16, #tpu.memory_space<vmem>>, vector<1x8x32xbf16>
    %98 = vector.shape_cast %97 : vector<1x8x32xbf16> to vector<8x32xbf16>
    %99 = arith.extf %98 : vector<8x32xbf16> to vector<8x32xf32>
    %100 = vector.extract_strided_slice %96 {offsets = [0, 0], sizes = [32, 8], strides = [1, 1]} : vector<32x72xf32> to vector<32x8xf32>
    %cst_54 = arith.constant dense<0.000000e+00> : vector<8x8xf32>
    %101 = tpu.matmul %99, %100, %cst_54 {dimension_numbers = #tpu.dot_dimension_numbers<[1], [0], [0], [1], [0, 0, 1, 1], [], []>} : vector<8x32xf32>, vector<32x8xf32>, vector<8x8xf32> -> vector<8x8xf32>
    %c1_55 = arith.constant 1 : index
    %c0_56 = arith.constant 0 : index
    %c0_57 = arith.constant 0 : index
    %102 = vector.load %arg5[%c1_55, %c0_56, %c0_57] : memref<9x8x32xbf16, #tpu.memory_space<vmem>>, vector<1x8x32xbf16>
    %103 = vector.shape_cast %102 : vector<1x8x32xbf16> to vector<8x32xbf16>
    %104 = arith.extf %103 : vector<8x32xbf16> to vector<8x32xf32>
    %105 = vector.extract_strided_slice %96 {offsets = [0, 8], sizes = [32, 8], strides = [1, 1]} : vector<32x72xf32> to vector<32x8xf32>
    %cst_58 = arith.constant dense<0.000000e+00> : vector<8x8xf32>
    %106 = tpu.matmul %104, %105, %cst_58 {dimension_numbers = #tpu.dot_dimension_numbers<[1], [0], [0], [1], [0, 0, 1, 1], [], []>} : vector<8x32xf32>, vector<32x8xf32>, vector<8x8xf32> -> vector<8x8xf32>
    %107 = arith.addf %101, %106 : vector<8x8xf32>
    %c2_59 = arith.constant 2 : index
    %c0_60 = arith.constant 0 : index
    %c0_61 = arith.constant 0 : index
    %108 = vector.load %arg5[%c2_59, %c0_60, %c0_61] : memref<9x8x32xbf16, #tpu.memory_space<vmem>>, vector<1x8x32xbf16>
    %109 = vector.shape_cast %108 : vector<1x8x32xbf16> to vector<8x32xbf16>
    %110 = arith.extf %109 : vector<8x32xbf16> to vector<8x32xf32>
    %111 = vector.extract_strided_slice %96 {offsets = [0, 16], sizes = [32, 8], strides = [1, 1]} : vector<32x72xf32> to vector<32x8xf32>
    %cst_62 = arith.constant dense<0.000000e+00> : vector<8x8xf32>
    %112 = tpu.matmul %110, %111, %cst_62 {dimension_numbers = #tpu.dot_dimension_numbers<[1], [0], [0], [1], [0, 0, 1, 1], [], []>} : vector<8x32xf32>, vector<32x8xf32>, vector<8x8xf32> -> vector<8x8xf32>
    %113 = arith.addf %107, %112 : vector<8x8xf32>
    %c3_63 = arith.constant 3 : index
    %c0_64 = arith.constant 0 : index
    %c0_65 = arith.constant 0 : index
    %114 = vector.load %arg5[%c3_63, %c0_64, %c0_65] : memref<9x8x32xbf16, #tpu.memory_space<vmem>>, vector<1x8x32xbf16>
    %115 = vector.shape_cast %114 : vector<1x8x32xbf16> to vector<8x32xbf16>
    %116 = arith.extf %115 : vector<8x32xbf16> to vector<8x32xf32>
    %117 = vector.extract_strided_slice %96 {offsets = [0, 24], sizes = [32, 8], strides = [1, 1]} : vector<32x72xf32> to vector<32x8xf32>
    %cst_66 = arith.constant dense<0.000000e+00> : vector<8x8xf32>
    %118 = tpu.matmul %116, %117, %cst_66 {dimension_numbers = #tpu.dot_dimension_numbers<[1], [0], [0], [1], [0, 0, 1, 1], [], []>} : vector<8x32xf32>, vector<32x8xf32>, vector<8x8xf32> -> vector<8x8xf32>
    %119 = arith.addf %113, %118 : vector<8x8xf32>
    %c4_67 = arith.constant 4 : index
    %c0_68 = arith.constant 0 : index
    %c0_69 = arith.constant 0 : index
    %120 = vector.load %arg5[%c4_67, %c0_68, %c0_69] : memref<9x8x32xbf16, #tpu.memory_space<vmem>>, vector<1x8x32xbf16>
    %121 = vector.shape_cast %120 : vector<1x8x32xbf16> to vector<8x32xbf16>
    %122 = arith.extf %121 : vector<8x32xbf16> to vector<8x32xf32>
    %123 = vector.extract_strided_slice %96 {offsets = [0, 32], sizes = [32, 8], strides = [1, 1]} : vector<32x72xf32> to vector<32x8xf32>
    %cst_70 = arith.constant dense<0.000000e+00> : vector<8x8xf32>
    %124 = tpu.matmul %122, %123, %cst_70 {dimension_numbers = #tpu.dot_dimension_numbers<[1], [0], [0], [1], [0, 0, 1, 1], [], []>} : vector<8x32xf32>, vector<32x8xf32>, vector<8x8xf32> -> vector<8x8xf32>
    %125 = arith.addf %119, %124 : vector<8x8xf32>
    %c5_71 = arith.constant 5 : index
    %c0_72 = arith.constant 0 : index
    %c0_73 = arith.constant 0 : index
    %126 = vector.load %arg5[%c5_71, %c0_72, %c0_73] : memref<9x8x32xbf16, #tpu.memory_space<vmem>>, vector<1x8x32xbf16>
    %127 = vector.shape_cast %126 : vector<1x8x32xbf16> to vector<8x32xbf16>
    %128 = arith.extf %127 : vector<8x32xbf16> to vector<8x32xf32>
    %129 = vector.extract_strided_slice %96 {offsets = [0, 40], sizes = [32, 8], strides = [1, 1]} : vector<32x72xf32> to vector<32x8xf32>
    %cst_74 = arith.constant dense<0.000000e+00> : vector<8x8xf32>
    %130 = tpu.matmul %128, %129, %cst_74 {dimension_numbers = #tpu.dot_dimension_numbers<[1], [0], [0], [1], [0, 0, 1, 1], [], []>} : vector<8x32xf32>, vector<32x8xf32>, vector<8x8xf32> -> vector<8x8xf32>
    %131 = arith.addf %125, %130 : vector<8x8xf32>
    %c6_75 = arith.constant 6 : index
    %c0_76 = arith.constant 0 : index
    %c0_77 = arith.constant 0 : index
    %132 = vector.load %arg5[%c6_75, %c0_76, %c0_77] : memref<9x8x32xbf16, #tpu.memory_space<vmem>>, vector<1x8x32xbf16>
    %133 = vector.shape_cast %132 : vector<1x8x32xbf16> to vector<8x32xbf16>
    %134 = arith.extf %133 : vector<8x32xbf16> to vector<8x32xf32>
    %135 = vector.extract_strided_slice %96 {offsets = [0, 48], sizes = [32, 8], strides = [1, 1]} : vector<32x72xf32> to vector<32x8xf32>
    %cst_78 = arith.constant dense<0.000000e+00> : vector<8x8xf32>
    %136 = tpu.matmul %134, %135, %cst_78 {dimension_numbers = #tpu.dot_dimension_numbers<[1], [0], [0], [1], [0, 0, 1, 1], [], []>} : vector<8x32xf32>, vector<32x8xf32>, vector<8x8xf32> -> vector<8x8xf32>
    %137 = arith.addf %131, %136 : vector<8x8xf32>
    %c7_79 = arith.constant 7 : index
    %c0_80 = arith.constant 0 : index
    %c0_81 = arith.constant 0 : index
    %138 = vector.load %arg5[%c7_79, %c0_80, %c0_81] : memref<9x8x32xbf16, #tpu.memory_space<vmem>>, vector<1x8x32xbf16>
    %139 = vector.shape_cast %138 : vector<1x8x32xbf16> to vector<8x32xbf16>
    %140 = arith.extf %139 : vector<8x32xbf16> to vector<8x32xf32>
    %141 = vector.extract_strided_slice %96 {offsets = [0, 56], sizes = [32, 8], strides = [1, 1]} : vector<32x72xf32> to vector<32x8xf32>
    %cst_82 = arith.constant dense<0.000000e+00> : vector<8x8xf32>
    %142 = tpu.matmul %140, %141, %cst_82 {dimension_numbers = #tpu.dot_dimension_numbers<[1], [0], [0], [1], [0, 0, 1, 1], [], []>} : vector<8x32xf32>, vector<32x8xf32>, vector<8x8xf32> -> vector<8x8xf32>
    %143 = arith.addf %137, %142 : vector<8x8xf32>
    %c8_83 = arith.constant 8 : index
    %c0_84 = arith.constant 0 : index
    %c0_85 = arith.constant 0 : index
    %144 = vector.load %arg5[%c8_83, %c0_84, %c0_85] : memref<9x8x32xbf16, #tpu.memory_space<vmem>>, vector<1x8x32xbf16>
    %145 = vector.shape_cast %144 : vector<1x8x32xbf16> to vector<8x32xbf16>
    %146 = arith.extf %145 : vector<8x32xbf16> to vector<8x32xf32>
    %147 = vector.extract_strided_slice %96 {offsets = [0, 64], sizes = [32, 8], strides = [1, 1]} : vector<32x72xf32> to vector<32x8xf32>
    %cst_86 = arith.constant dense<0.000000e+00> : vector<8x8xf32>
    %148 = tpu.matmul %146, %147, %cst_86 {dimension_numbers = #tpu.dot_dimension_numbers<[1], [0], [0], [1], [0, 0, 1, 1], [], []>} : vector<8x32xf32>, vector<32x8xf32>, vector<8x8xf32> -> vector<8x8xf32>
    %149 = arith.addf %143, %148 : vector<8x8xf32>
    %cst_87 = arith.constant dense<0.000000e+00> : vector<8xf32>
    %150 = vector.multi_reduction <add>, %149, %cst_87 [0] : vector<8x8xf32> to vector<8xf32>
    %151 = vector.shape_cast %150 : vector<8xf32> to vector<1x8xf32>
    %cst_88 = arith.constant 8.000000e+00 : f32
    %152 = vector.broadcast %cst_88 : f32 to vector<1x8xf32>
    %153 = arith.divf %151, %152 : vector<1x8xf32>
    %154 = vector.broadcast %153 : vector<1x8xf32> to vector<8x8xf32>
    %155 = arith.subf %149, %154 : vector<8x8xf32>
    %156 = arith.mulf %155, %155 : vector<8x8xf32>
    %cst_89 = arith.constant dense<0.000000e+00> : vector<8xf32>
    %157 = vector.multi_reduction <add>, %156, %cst_89 [0] : vector<8x8xf32> to vector<8xf32>
    %158 = vector.shape_cast %157 : vector<8xf32> to vector<1x8xf32>
    %cst_90 = arith.constant 8.000000e+00 : f32
    %159 = vector.broadcast %cst_90 : f32 to vector<1x8xf32>
    %160 = arith.divf %158, %159 : vector<1x8xf32>
    %c0_91 = arith.constant 0 : index
    %c16 = arith.constant 16 : index
    %161 = vector.load %arg8[%c0_91, %c16] : memref<2x29xf32, #tpu.memory_space<vmem>>, vector<1x8xf32>
    %c1_92 = arith.constant 1 : index
    %c16_93 = arith.constant 16 : index
    %162 = vector.load %arg8[%c1_92, %c16_93] : memref<2x29xf32, #tpu.memory_space<vmem>>, vector<1x8xf32>
    %163 = vector.broadcast %153 : vector<1x8xf32> to vector<8x8xf32>
    %164 = arith.subf %149, %163 : vector<8x8xf32>
    %cst_94 = arith.constant 9.99999974E-6 : f32
    %165 = vector.broadcast %cst_94 : f32 to vector<1x8xf32>
    %166 = arith.addf %160, %165 : vector<1x8xf32>
    %167 = math.rsqrt %166 : vector<1x8xf32>
    %168 = vector.broadcast %167 : vector<1x8xf32> to vector<8x8xf32>
    %169 = arith.mulf %164, %168 : vector<8x8xf32>
    %170 = vector.broadcast %161 : vector<1x8xf32> to vector<8x8xf32>
    %171 = arith.mulf %169, %170 : vector<8x8xf32>
    %172 = vector.broadcast %162 : vector<1x8xf32> to vector<8x8xf32>
    %173 = arith.addf %171, %172 : vector<8x8xf32>
    %cst_95 = arith.constant 0.000000e+00 : f32
    %174 = vector.broadcast %cst_95 : f32 to vector<8x8xf32>
    %175 = arith.cmpf ogt, %173, %174 : vector<8x8xf32>
    %cst_96 = arith.constant 2.000000e-01 : f32
    %176 = vector.broadcast %cst_96 : f32 to vector<8x8xf32>
    %177 = arith.mulf %176, %173 : vector<8x8xf32>
    %178 = arith.select %175, %173, %177 : vector<8x8xi1>, vector<8x8xf32>
    %c0_97 = arith.constant 0 : index
    %c216 = arith.constant 216 : index
    %179 = vector.load %arg3[%c0_97, %c216] : memref<16x233xf32, #tpu.memory_space<vmem>>, vector<8x16xf32>
    %cst_98 = arith.constant dense<0.000000e+00> : vector<8x16xf32>
    %180 = tpu.matmul %178, %179, %cst_98 {dimension_numbers = #tpu.dot_dimension_numbers<[1], [0], [0], [1], [0, 0, 1, 1], [], []>} : vector<8x8xf32>, vector<8x16xf32>, vector<8x16xf32> -> vector<8x16xf32>
    %c0_99 = arith.constant 0 : index
    %c0_100 = arith.constant 0 : index
    %c0_101 = arith.constant 0 : index
    %181 = vector.load %arg6[%c0_99, %c0_100, %c0_101] : memref<4x2x8xbf16, #tpu.memory_space<vmem>>, vector<1x2x8xbf16>
    %182 = vector.shape_cast %181 : vector<1x2x8xbf16> to vector<2x8xbf16>
    %183 = arith.extf %182 : vector<2x8xbf16> to vector<2x8xf32>
    %184 = vector.extract_strided_slice %180 {offsets = [0, 0], sizes = [8, 4], strides = [1, 1]} : vector<8x16xf32> to vector<8x4xf32>
    %cst_102 = arith.constant dense<0.000000e+00> : vector<2x4xf32>
    %185 = tpu.matmul %183, %184, %cst_102 {dimension_numbers = #tpu.dot_dimension_numbers<[1], [0], [0], [1], [0, 0, 1, 1], [], []>} : vector<2x8xf32>, vector<8x4xf32>, vector<2x4xf32> -> vector<2x4xf32>
    %c1_103 = arith.constant 1 : index
    %c0_104 = arith.constant 0 : index
    %c0_105 = arith.constant 0 : index
    %186 = vector.load %arg6[%c1_103, %c0_104, %c0_105] : memref<4x2x8xbf16, #tpu.memory_space<vmem>>, vector<1x2x8xbf16>
    %187 = vector.shape_cast %186 : vector<1x2x8xbf16> to vector<2x8xbf16>
    %188 = arith.extf %187 : vector<2x8xbf16> to vector<2x8xf32>
    %189 = vector.extract_strided_slice %180 {offsets = [0, 4], sizes = [8, 4], strides = [1, 1]} : vector<8x16xf32> to vector<8x4xf32>
    %cst_106 = arith.constant dense<0.000000e+00> : vector<2x4xf32>
    %190 = tpu.matmul %188, %189, %cst_106 {dimension_numbers = #tpu.dot_dimension_numbers<[1], [0], [0], [1], [0, 0, 1, 1], [], []>} : vector<2x8xf32>, vector<8x4xf32>, vector<2x4xf32> -> vector<2x4xf32>
    %191 = arith.addf %185, %190 : vector<2x4xf32>
    %c2_107 = arith.constant 2 : index
    %c0_108 = arith.constant 0 : index
    %c0_109 = arith.constant 0 : index
    %192 = vector.load %arg6[%c2_107, %c0_108, %c0_109] : memref<4x2x8xbf16, #tpu.memory_space<vmem>>, vector<1x2x8xbf16>
    %193 = vector.shape_cast %192 : vector<1x2x8xbf16> to vector<2x8xbf16>
    %194 = arith.extf %193 : vector<2x8xbf16> to vector<2x8xf32>
    %195 = vector.extract_strided_slice %180 {offsets = [0, 8], sizes = [8, 4], strides = [1, 1]} : vector<8x16xf32> to vector<8x4xf32>
    %cst_110 = arith.constant dense<0.000000e+00> : vector<2x4xf32>
    %196 = tpu.matmul %194, %195, %cst_110 {dimension_numbers = #tpu.dot_dimension_numbers<[1], [0], [0], [1], [0, 0, 1, 1], [], []>} : vector<2x8xf32>, vector<8x4xf32>, vector<2x4xf32> -> vector<2x4xf32>
    %197 = arith.addf %191, %196 : vector<2x4xf32>
    %c3_111 = arith.constant 3 : index
    %c0_112 = arith.constant 0 : index
    %c0_113 = arith.constant 0 : index
    %198 = vector.load %arg6[%c3_111, %c0_112, %c0_113] : memref<4x2x8xbf16, #tpu.memory_space<vmem>>, vector<1x2x8xbf16>
    %199 = vector.shape_cast %198 : vector<1x2x8xbf16> to vector<2x8xbf16>
    %200 = arith.extf %199 : vector<2x8xbf16> to vector<2x8xf32>
    %201 = vector.extract_strided_slice %180 {offsets = [0, 12], sizes = [8, 4], strides = [1, 1]} : vector<8x16xf32> to vector<8x4xf32>
    %cst_114 = arith.constant dense<0.000000e+00> : vector<2x4xf32>
    %202 = tpu.matmul %200, %201, %cst_114 {dimension_numbers = #tpu.dot_dimension_numbers<[1], [0], [0], [1], [0, 0, 1, 1], [], []>} : vector<2x8xf32>, vector<8x4xf32>, vector<2x4xf32> -> vector<2x4xf32>
    %203 = arith.addf %197, %202 : vector<2x4xf32>
    %cst_115 = arith.constant dense<0.000000e+00> : vector<4xf32>
    %204 = vector.multi_reduction <add>, %203, %cst_115 [0] : vector<2x4xf32> to vector<4xf32>
    %205 = vector.shape_cast %204 : vector<4xf32> to vector<1x4xf32>
    %cst_116 = arith.constant 2.000000e+00 : f32
    %206 = vector.broadcast %cst_116 : f32 to vector<1x4xf32>
    %207 = arith.divf %205, %206 : vector<1x4xf32>
    %208 = vector.broadcast %207 : vector<1x4xf32> to vector<2x4xf32>
    %209 = arith.subf %203, %208 : vector<2x4xf32>
    %210 = arith.mulf %209, %209 : vector<2x4xf32>
    %cst_117 = arith.constant dense<0.000000e+00> : vector<4xf32>
    %211 = vector.multi_reduction <add>, %210, %cst_117 [0] : vector<2x4xf32> to vector<4xf32>
    %212 = vector.shape_cast %211 : vector<4xf32> to vector<1x4xf32>
    %cst_118 = arith.constant 2.000000e+00 : f32
    %213 = vector.broadcast %cst_118 : f32 to vector<1x4xf32>
    %214 = arith.divf %212, %213 : vector<1x4xf32>
    %c0_119 = arith.constant 0 : index
    %c24 = arith.constant 24 : index
    %215 = vector.load %arg8[%c0_119, %c24] : memref<2x29xf32, #tpu.memory_space<vmem>>, vector<1x4xf32>
    %c1_120 = arith.constant 1 : index
    %c24_121 = arith.constant 24 : index
    %216 = vector.load %arg8[%c1_120, %c24_121] : memref<2x29xf32, #tpu.memory_space<vmem>>, vector<1x4xf32>
    %217 = vector.broadcast %207 : vector<1x4xf32> to vector<2x4xf32>
    %218 = arith.subf %203, %217 : vector<2x4xf32>
    %cst_122 = arith.constant 9.99999974E-6 : f32
    %219 = vector.broadcast %cst_122 : f32 to vector<1x4xf32>
    %220 = arith.addf %214, %219 : vector<1x4xf32>
    %221 = math.rsqrt %220 : vector<1x4xf32>
    %222 = vector.broadcast %221 : vector<1x4xf32> to vector<2x4xf32>
    %223 = arith.mulf %218, %222 : vector<2x4xf32>
    %224 = vector.broadcast %215 : vector<1x4xf32> to vector<2x4xf32>
    %225 = arith.mulf %223, %224 : vector<2x4xf32>
    %226 = vector.broadcast %216 : vector<1x4xf32> to vector<2x4xf32>
    %227 = arith.addf %225, %226 : vector<2x4xf32>
    %cst_123 = arith.constant 0.000000e+00 : f32
    %228 = vector.broadcast %cst_123 : f32 to vector<2x4xf32>
    %229 = arith.cmpf ogt, %227, %228 : vector<2x4xf32>
    %cst_124 = arith.constant 2.000000e-01 : f32
    %230 = vector.broadcast %cst_124 : f32 to vector<2x4xf32>
    %231 = arith.mulf %230, %227 : vector<2x4xf32>
    %232 = arith.select %229, %227, %231 : vector<2x4xi1>, vector<2x4xf32>
    %c0_125 = arith.constant 0 : index
    %c232 = arith.constant 232 : index
    %233 = vector.load %arg3[%c0_125, %c232] : memref<16x233xf32, #tpu.memory_space<vmem>>, vector<4x1xf32>
    %cst_126 = arith.constant dense<0.000000e+00> : vector<2x1xf32>
    %234 = tpu.matmul %232, %233, %cst_126 {dimension_numbers = #tpu.dot_dimension_numbers<[1], [0], [0], [1], [0, 0, 1, 1], [], []>} : vector<2x4xf32>, vector<4x1xf32>, vector<2x1xf32> -> vector<2x1xf32>
    %c0_127 = arith.constant 0 : index
    %c0_128 = arith.constant 0 : index
    %c0_129 = arith.constant 0 : index
    %235 = vector.load %arg7[%c0_127, %c0_128, %c0_129] : memref<1x2x2xbf16, #tpu.memory_space<vmem>>, vector<1x2x2xbf16>
    %236 = vector.shape_cast %235 : vector<1x2x2xbf16> to vector<2x2xbf16>
    %237 = arith.extf %236 : vector<2x2xbf16> to vector<2x2xf32>
    %cst_130 = arith.constant dense<0.000000e+00> : vector<2x1xf32>
    %238 = tpu.matmul %237, %234, %cst_130 {dimension_numbers = #tpu.dot_dimension_numbers<[1], [0], [0], [1], [0, 0, 1, 1], [], []>} : vector<2x2xf32>, vector<2x1xf32>, vector<2x1xf32> -> vector<2x1xf32>
    %cst_131 = arith.constant dense<0.000000e+00> : vector<1xf32>
    %239 = vector.multi_reduction <add>, %238, %cst_131 [0] : vector<2x1xf32> to vector<1xf32>
    %240 = vector.shape_cast %239 : vector<1xf32> to vector<1x1xf32>
    %cst_132 = arith.constant 2.000000e+00 : f32
    %241 = vector.broadcast %cst_132 : f32 to vector<1x1xf32>
    %242 = arith.divf %240, %241 : vector<1x1xf32>
    %243 = vector.broadcast %242 : vector<1x1xf32> to vector<2x1xf32>
    %244 = arith.subf %238, %243 : vector<2x1xf32>
    %245 = arith.mulf %244, %244 : vector<2x1xf32>
    %cst_133 = arith.constant dense<0.000000e+00> : vector<1xf32>
    %246 = vector.multi_reduction <add>, %245, %cst_133 [0] : vector<2x1xf32> to vector<1xf32>
    %247 = vector.shape_cast %246 : vector<1xf32> to vector<1x1xf32>
    %cst_134 = arith.constant 2.000000e+00 : f32
    %248 = vector.broadcast %cst_134 : f32 to vector<1x1xf32>
    %249 = arith.divf %247, %248 : vector<1x1xf32>
    %c0_135 = arith.constant 0 : index
    %c28 = arith.constant 28 : index
    %250 = vector.load %arg8[%c0_135, %c28] : memref<2x29xf32, #tpu.memory_space<vmem>>, vector<1x1xf32>
    %c1_136 = arith.constant 1 : index
    %c28_137 = arith.constant 28 : index
    %251 = vector.load %arg8[%c1_136, %c28_137] : memref<2x29xf32, #tpu.memory_space<vmem>>, vector<1x1xf32>
    %252 = vector.broadcast %242 : vector<1x1xf32> to vector<2x1xf32>
    %253 = arith.subf %238, %252 : vector<2x1xf32>
    %cst_138 = arith.constant 9.99999974E-6 : f32
    %254 = vector.broadcast %cst_138 : f32 to vector<1x1xf32>
    %255 = arith.addf %249, %254 : vector<1x1xf32>
    %256 = math.rsqrt %255 : vector<1x1xf32>
    %257 = vector.broadcast %256 : vector<1x1xf32> to vector<2x1xf32>
    %258 = arith.mulf %253, %257 : vector<2x1xf32>
    %259 = vector.broadcast %250 : vector<1x1xf32> to vector<2x1xf32>
    %260 = arith.mulf %258, %259 : vector<2x1xf32>
    %261 = vector.broadcast %251 : vector<1x1xf32> to vector<2x1xf32>
    %262 = arith.addf %260, %261 : vector<2x1xf32>
    %cst_139 = arith.constant 5.000000e-01 : f32
    %263 = vector.broadcast %cst_139 : f32 to vector<2x1xf32>
    %264 = arith.mulf %263, %262 : vector<2x1xf32>
    %265 = math.tanh %264 : vector<2x1xf32>
    %cst_140 = arith.constant 1.000000e+00 : f32
    %266 = vector.broadcast %cst_140 : f32 to vector<2x1xf32>
    %267 = arith.addf %265, %266 : vector<2x1xf32>
    %cst_141 = arith.constant 5.000000e-01 : f32
    %268 = vector.broadcast %cst_141 : f32 to vector<2x1xf32>
    %269 = arith.mulf %268, %267 : vector<2x1xf32>
    %c0_142 = arith.constant 0 : index
    %c0_143 = arith.constant 0 : index
    %270 = vector.load %arg9[%c0_142, %c0_143] : memref<2x1xf32, #tpu.memory_space<vmem>>, vector<2x1xf32>
    tpu.vector_store %arg9[%c0_142, %c0_143], %269 {strides = array<i32>} : memref<2x1xf32, #tpu.memory_space<vmem>>, vector<2x1xf32>,
    return
  }
}

</mosaic_0001>

<bundles_post_ra>
// kernel: discriminator_forward.1
= control target key start
LH: loop header
LB: loop body
LE: loop exit
PB: predicated region body
PF: predicated region fallthrough
CT: control target
= control target key end

     0   :  { %vm57_vm0 = vcmask 130048   ;;  %v5137_v21 = vmov 0.0   ;;  %vm301_vm2 = vcmask 64512   ;;  %s5139_s29 = smov 80   ;;  %s5140_s30 = smov 64   ;;  %s5808_s1 = inlined_call_operand.vmem [shape: f32[16,8], index: 1, kind: input, shape index: {}]   ;;  %s5809_s0 = inlined_call_operand.vmem [shape: f32[128,16], index: 0, kind: input, shape index: {}]   ;;  %s5810_s3 = inlined_call_operand.vmem [shape: f32[16,233], index: 3, kind: input, shape index: {}]   ;;  %s5811_s2 = inlined_call_operand.vmem [shape: f32[1,8], index: 2, kind: input, shape index: {}]   ;;  %s5812_s4 = inlined_call_operand.vmem [shape: bf16[9,32,128], index: 4, kind: input, shape index: {}]   ;;  %s5813_s8 = inlined_call_operand.vmem [shape: f32[2,29], index: 8, kind: input, shape index: {}]   ;;  %s5814_s5 = inlined_call_operand.vmem [shape: bf16[9,8,32], index: 5, kind: input, shape index: {}]   ;;  %s5815_s6 = inlined_call_operand.vmem [shape: bf16[4,2,8], index: 6, kind: input, shape index: {}]   ;;  %s5816_s7 = inlined_call_operand.vmem [shape: bf16[1,2,2], index: 7, kind: input, shape index: {}]   ;;  %s5817_s9 = inlined_call_operand.vmem [shape: f32[2,1], index: 9, kind: output, shape index: {}]  }
   0x1   :  { %v48_v0 = vld [vmem:[%s5808_s1] sm:$0xff]  ;;  %v49_v1 = vld [vmem:[%s5808_s1 + $0x8] sm:$0xff]  ;;  %v34_v5 = vld [vmem:[%s5809_s0 + $0x10] sm:$0xff]  ;;  %414 = vmatprep.mubr.f32.mxu1 %v5137_v21  ;;  %s5141_s10 = smov 48   ;;  %s5142_s11 = smov 32  }
   0x2   :  { %v32_v2 = vld [vmem:[%s5809_s0] sm:$0xff]  ;;  %v4338_v3 = vpack.c.bf16 %v49_v1, %v48_v0  ;;  %v33_v4 = vld [vmem:[%s5809_s0 + $0x8] sm:$0xff]  ;;  %v35_v6 = vld [vmem:[%s5809_s0 + $0x18] sm:$0xff]  ;;  %s5143_s12 = smov 112   ;;  %s5144_s13 = smov 16  }
   0x3   :  { %3828 = vmatprep.mubr.msk.f32.mxu0 %vm57_vm0, %v32_v2  ;;  %v36_v7 = vld [vmem:[%s5809_s0 + $0x20] sm:$0xff]  ;;  %v37_v8 = vld [vmem:[%s5809_s0 + $0x28] sm:$0xff]  ;;  %v38_v9 = vld [vmem:[%s5809_s0 + $0x30] sm:$0xff]  ;;  %s5148_s15 = smov 104   ;;  %s5149_s16 = smov 88  }
   0x4   :  { %4339 = vmatprep.subr.bf16.mxu0 %v4338_v3  ;;  %v39_v10 = vld [vmem:[%s5809_s0 + $0x38] sm:$0xff]  ;;  %v40_v11 = vld [vmem:[%s5809_s0 + $0x40] sm:$0xff]  ;;  %v41_v12 = vld [vmem:[%s5809_s0 + $0x48] sm:$0xff]  ;;  %s5150_s17 = smov 72   ;;  %s5151_s1 = smov 40  }
   0x5   :  { %4341 = vmatpush3.bf16.msra.mxu0 %v4338_v3  ;;  %v42_v13 = vld [vmem:[%s5809_s0 + $0x50] sm:$0xff]  ;;  %v43_v14 = vld [vmem:[%s5809_s0 + $0x58] sm:$0xff]  ;;  %v44_v15 = vld [vmem:[%s5809_s0 + $0x60] sm:$0xff]  ;;  %s5153_s26 = smov 116   ;;  %s5154_s28 = smov 24  }
   0x6   :  { %v45_v16 = vld [vmem:[%s5809_s0 + $0x68] sm:$0xff]  ;;  %v46_v17 = vld [vmem:[%s5809_s0 + $0x70] sm:$0xff]  ;;  %v47_v18 = vld [vmem:[%s5809_s0 + $0x78] sm:$0xff]  ;;  %s5138_s0 = smov 96  }
   0x7   :  { %v300_v19 = vld [vmem:[%s5810_s3 + $0x8] sm:$0xff]  ;;  %v299_v20 = vld [vmem:[%s5810_s3] sm:$0xff] }
   0x8   :  { %3829 = vmatmul.mubr.msk.f32.vlgmr.msra.gmra.mrb[0].mxu0 %vm57_vm0, %v33_v4  ;;  %350 = vmatprep.subr.mxu1 %v300_v19  ;;  %v5286_v22 = vld [vmem:[%s5811_s2] ss:$0 sm:$0xff] }
   0x9   :  { %3831 = vmatprep.mubr.msk.f32.mxu0 %vm57_vm0, %v34_v5  ;;  %351 = vmatpush1.msra.mxu1 %v299_v20 }
   0xc   :  { %3832 = vmatmul.mubr.msk.f32.gmra.mrb[2].mxu0 %vm57_vm0, %v35_v6 }
   0xd   :  { %3834 = vmatprep.mubr.msk.f32.mxu0 %vm57_vm0, %v36_v7 }
  0x10   :  { %3835 = vmatmul.mubr.msk.f32.gmra.mrb[4].mxu0 %vm57_vm0, %v37_v8 }
  0x11   :  { %3837 = vmatprep.mubr.msk.f32.mxu0 %vm57_vm0, %v38_v9 }
  0x14   :  { %3838 = vmatmul.mubr.msk.f32.gmra.mrb[6].mxu0 %vm57_vm0, %v39_v10 }
  0x15   :  { %3840 = vmatprep.mubr.msk.f32.mxu0 %vm57_vm0, %v40_v11 }
  0x18   :  { %3841 = vmatmul.mubr.msk.f32.gmra.mrb[8].mxu0 %vm57_vm0, %v41_v12 }
  0x19   :  { %3843 = vmatprep.mubr.msk.f32.mxu0 %vm57_vm0, %v42_v13 }
  0x1c   :  { %3844 = vmatmul.mubr.msk.f32.gmra.mrb[10].mxu0 %vm57_vm0, %v43_v14 }
  0x1d   :  { %3846 = vmatprep.mubr.msk.f32.mxu0 %vm57_vm0, %v44_v15 }
  0x20   :  { %3847 = vmatmul.mubr.msk.f32.gmra.mrb[12].mxu0 %vm57_vm0, %v45_v16 }
  0x21   :  { %3849 = vmatprep.mubr.msk.f32.mxu0 %vm57_vm0, %v46_v17 }
  0x24   :  { %3850 = vmatmul.mubr.msk.f32.gmra.mrb[14].mxu0 %vm57_vm0, %v47_v18 }
  0xdb   :  { %v3830_v23 = vpop.f32.mrb[0].mxu0 }
  0xdc   :  { %v172_v24 = vpop.f32.mrb[1].mxu0  ;;  %v178_v25 = vadd.f32 %v3830_v23, %v5286_v22 }
  0xdd   :  { %v173_v26 = vadd.f32 %v5286_v22, %v172_v24 }
  0xde   :  { %v268_v30 = vmul.f32 0.2, %v178_v25  ;;  %vm252_vm3 = vcmp.gt.f32.partialorder %v178_v25, 0.0 }
  0xdf   :  { %vm251_vm1 = vcmp.gt.f32.partialorder %v173_v26, 0.0  ;;  %v267_v27 = vmul.f32 0.2, %v173_v26  ;;  %v3833_v28 = vpop.f32.mrb[2].mxu0 }
  0xe0   :  { %v182_v29 = vpop.f32.mrb[3].mxu0  ;;  %v188_v35 = vadd.f32 %v3833_v28, %v5286_v22  ;;  %v284_v37 = vsel %vm252_vm3, %v178_v25, %v268_v30 }
  0xe1   :  { %v183_v31 = vadd.f32 %v5286_v22, %v182_v29  ;;  %v283_v32 = vsel %vm251_vm1, %v173_v26, %v267_v27 }
  0xe2   :  { %3385 = vmatmul.mubr.msk.f32.vlgmr.msra.gmra.mrb[0].mxu1 %vm301_vm2, %v283_v32  ;;  %v270_v40 = vmul.f32 0.2, %v188_v35  ;;  %vm254_vm5 = vcmp.gt.f32.partialorder %v188_v35, 0.0 }
  0xe3   :  { %420 = vmatprep.mubr.f32.mxu1 %v5137_v21  ;;  %v3836_v33 = vpop.f32.mrb[4].mxu0  ;;  %v269_v36 = vmul.f32 0.2, %v183_v31  ;;  %vm253_vm4 = vcmp.gt.f32.partialorder %v183_v31, 0.0 }
  0xe4   :  { %v192_v34 = vpop.f32.mrb[5].mxu0  ;;  %v198_v45 = vadd.f32 %v3836_v33, %v5286_v22  ;;  %v286_v47 = vsel %vm254_vm5, %v188_v35, %v270_v40 }
  0xe5   :  { %v193_v41 = vadd.f32 %v5286_v22, %v192_v34  ;;  %v285_v42 = vsel %vm253_vm4, %v183_v31, %v269_v36 }
  0xe6   :  { %3386 = vmatmul.mubr.msk.f32.gmra.mrb[2].mxu1 %vm301_vm2, %v284_v37  ;;  %v272_v50 = vmul.f32 0.2, %v198_v45  ;;  %vm256_vm7 = vcmp.gt.f32.partialorder %v198_v45, 0.0 }
  0xe7   :  { %426 = vmatprep.mubr.f32.mxu1 %v5137_v21  ;;  %v3839_v38 = vpop.f32.mrb[6].mxu0  ;;  %v271_v46 = vmul.f32 0.2, %v193_v41  ;;  %vm255_vm6 = vcmp.gt.f32.partialorder %v193_v41, 0.0 }
  0xe8   :  { %v202_v39 = vpop.f32.mrb[7].mxu0  ;;  %v208_v55 = vadd.f32 %v3839_v38, %v5286_v22  ;;  %v288_v57 = vsel %vm256_vm7, %v198_v45, %v272_v50 }
  0xe9   :  { %v203_v51 = vadd.f32 %v5286_v22, %v202_v39  ;;  %v287_v52 = vsel %vm255_vm6, %v193_v41, %v271_v46 }
  0xea   :  { %3387 = vmatmul.mubr.msk.f32.gmra.mrb[4].mxu1 %vm301_vm2, %v285_v42  ;;  %v274_v60 = vmul.f32 0.2, %v208_v55  ;;  %vm258_vm9 = vcmp.gt.f32.partialorder %v208_v55, 0.0 }
  0xeb   :  { %432 = vmatprep.mubr.f32.mxu1 %v5137_v21  ;;  %v3842_v43 = vpop.f32.mrb[8].mxu0  ;;  %v273_v56 = vmul.f32 0.2, %v203_v51  ;;  %vm257_vm8 = vcmp.gt.f32.partialorder %v203_v51, 0.0 }
  0xec   :  { %v212_v44 = vpop.f32.mrb[9].mxu0  ;;  %v218_v63 = vadd.f32 %v3842_v43, %v5286_v22  ;;  %v290_v1 = vsel %vm258_vm9, %v208_v55, %v274_v60 }
  0xed   :  { %v213_v61 = vadd.f32 %v5286_v22, %v212_v44  ;;  %v289_v62 = vsel %vm257_vm8, %v203_v51, %v273_v56  ;;  %vm5146_vm8 = vmmov 0  }
  0xee   :  { %3388 = vmatmul.mubr.msk.f32.gmra.mrb[6].mxu1 %vm301_vm2, %v286_v47  ;;  %v276_v2 = vmul.f32 0.2, %v218_v63  ;;  %vm260_vm11 = vcmp.gt.f32.partialorder %v218_v63, 0.0 }
  0xef   :  { %438 = vmatprep.mubr.f32.mxu1 %v5137_v21  ;;  %v3845_v48 = vpop.f32.mrb[10].mxu0  ;;  %v275_v0 = vmul.f32 0.2, %v213_v61  ;;  %vm259_vm10 = vcmp.gt.f32.partialorder %v213_v61, 0.0 }
  0xf0   :  { %v222_v49 = vpop.f32.mrb[11].mxu0  ;;  %v228_v5 = vadd.f32 %v3845_v48, %v5286_v22  ;;  %v292_v7 = vsel %vm260_vm11, %v218_v63, %v276_v2  ;;  %vm3134_vm11 = vcmask 25600  }
  0xf1   :  { %v223_v3 = vadd.f32 %v5286_v22, %v222_v49  ;;  %v291_v4 = vsel %vm259_vm10, %v213_v61, %v275_v0  ;;  %vm3176_vm10 = vcmask 1043456  }
  0xf2   :  { %3389 = vmatmul.mubr.msk.f32.gmra.mrb[8].mxu1 %vm301_vm2, %v287_v52  ;;  %v278_v8 = vmul.f32 0.2, %v228_v5  ;;  %vm262_vm13 = vcmp.gt.f32.partialorder %v228_v5, 0.0 }
  0xf3   :  { %444 = vmatprep.mubr.f32.mxu1 %v5137_v21  ;;  %v3848_v53 = vpop.f32.mrb[12].mxu0  ;;  %v277_v6 = vmul.f32 0.2, %v223_v3  ;;  %vm261_vm12 = vcmp.gt.f32.partialorder %v223_v3, 0.0 }
  0xf4   :  { %v232_v54 = vpop.f32.mrb[13].mxu0  ;;  %v238_v11 = vadd.f32 %v3848_v53, %v5286_v22  ;;  %v294_v13 = vsel %vm262_vm13, %v228_v5, %v278_v8  ;;  %vm3255_vm13 = vcmask 1041408  }
  0xf5   :  { %v233_v9 = vadd.f32 %v5286_v22, %v232_v54  ;;  %v293_v10 = vsel %vm261_vm12, %v223_v3, %v277_v6  ;;  %vm3172_vm12 = vcmask 31744  }
  0xf6   :  { %3390 = vmatmul.mubr.msk.f32.gmra.mrb[10].mxu1 %vm301_vm2, %v288_v57  ;;  %v280_v14 = vmul.f32 0.2, %v238_v11  ;;  %vm264_vm15 = vcmp.gt.f32.partialorder %v238_v11, 0.0 }
  0xf7   :  { %450 = vmatprep.mubr.f32.mxu1 %v5137_v21  ;;  %v3851_v58 = vpop.f32.mrb[14].mxu0  ;;  %v279_v12 = vmul.f32 0.2, %v233_v9  ;;  %vm263_vm14 = vcmp.gt.f32.partialorder %v233_v9, 0.0 }
  0xf8   :  { %v242_v59 = vpop.f32.mrb[15].mxu0  ;;  %v248_v17 = vadd.f32 %v3851_v58, %v5286_v22  ;;  %v296_v19 = vsel %vm264_vm15, %v238_v11, %v280_v14  ;;  %vm3329_vm15 = vcmask 1024  }
  0xf9   :  { %v243_v15 = vadd.f32 %v5286_v22, %v242_v59  ;;  %v295_v16 = vsel %vm263_vm14, %v233_v9, %v279_v12  ;;  %vm3251_vm14 = vcmask 15360  }
  0xfa   :  { %3391 = vmatmul.mubr.msk.f32.gmra.mrb[12].mxu1 %vm301_vm2, %v289_v62  ;;  %v282_v20 = vmul.f32 0.2, %v248_v17  ;;  %vm266_vm3 = vcmp.gt.f32.partialorder %v248_v17, 0.0 }
  0xfb   :  { %456 = vmatprep.mubr.f32.mxu1 %v5137_v21  ;;  %v281_v18 = vmul.f32 0.2, %v243_v15  ;;  %vm265_vm1 = vcmp.gt.f32.partialorder %v243_v15, 0.0 }
  0xfc   :  { %v298_v24 = vsel %vm266_vm3, %v248_v17, %v282_v20 }
  0xfd   :  { %v297_v23 = vsel %vm265_vm1, %v243_v15, %v281_v18 }
  0xfe   :  { %3392 = vmatmul.mubr.msk.f32.gmra.mrb[14].mxu1 %vm301_vm2, %v290_v1 }
  0xff   :  { %462 = vmatprep.mubr.f32.mxu1 %v5137_v21 }
 0x102   :  { %3393 = vmatmul.mubr.msk.f32.gmra.mrb[16].mxu1 %vm301_vm2, %v291_v4 }
 0x103   :  { %468 = vmatprep.mubr.f32.mxu1 %v5137_v21 }
 0x106   :  { %3394 = vmatmul.mubr.msk.f32.gmra.mrb[18].mxu1 %vm301_vm2, %v292_v7 }
 0x107   :  { %474 = vmatprep.mubr.f32.mxu1 %v5137_v21 }
 0x10a   :  { %3395 = vmatmul.mubr.msk.f32.gmra.mrb[20].mxu1 %vm301_vm2, %v293_v10  ;;  %v5394_v10 = vld [vmem:[%s5812_s4 + $0x20] sm:$0xff]  }
 0x10b   :  { %480 = vmatprep.mubr.f32.mxu1 %v5137_v21  ;;  %v3486_v12 = vunpack.c.l.bf16 %v5394_v10 }
 0x10d   :  { %3960 = vmatprep.mubr.f32.mxu0 %v3486_v12 }
 0x10e   :  { %3396 = vmatmul.mubr.msk.f32.gmra.mrb[22].mxu1 %vm301_vm2, %v294_v13 }
 0x10f   :  { %486 = vmatprep.mubr.f32.mxu1 %v5137_v21 }
 0x112   :  { %3397 = vmatmul.mubr.msk.f32.gmra.mrb[24].mxu1 %vm301_vm2, %v295_v16 }
 0x113   :  { %492 = vmatprep.mubr.f32.mxu1 %v5137_v21 }
 0x116   :  { %3398 = vmatmul.mubr.msk.f32.gmra.mrb[26].mxu1 %vm301_vm2, %v296_v19 }
 0x117   :  { %498 = vmatprep.mubr.f32.mxu1 %v5137_v21 }
 0x11a   :  { %3399 = vmatmul.mubr.msk.f32.gmra.mrb[28].mxu1 %vm301_vm2, %v297_v23 }
 0x11b   :  { %504 = vmatprep.mubr.f32.mxu1 %v5137_v21 }
 0x11e   :  { %3400 = vmatmul.mubr.msk.f32.gmra.mrb[30].mxu1 %vm301_vm2, %v298_v24 }
 0x1b5   :  { %v416_v25 = vpop.f32.mrb[0].mxu1 }
 0x1b6   :  { %v418_v26 = vpop.f32.mrb[1].mxu1 }
 0x1b9   :  { %v422_v22 = vpop.f32.mrb[2].mxu1 }
 0x1ba   :  { %v424_v27 = vpop.f32.mrb[3].mxu1  ;;  %v5335_v28 = vpack.i.bf16 %v422_v22, %v416_v25  ;;  %v5341_v30 = vpack.c.bf16 %v422_v22, %v416_v25 }
 0x1bb   :  { %v5337_v29 = vpack.c.bf16 %v424_v27, %v418_v26 }
 0x1bc   :  { %4762 = vrot.lane.b32.xlu0 %v5335_v28, %s5138_s0 }
 0x1bd   :  { %v428_v31 = vpop.f32.mrb[4].mxu1 }
 0x1be   :  { %v430_v32 = vpop.f32.mrb[5].mxu1 }
 0x1c1   :  { %v434_v33 = vpop.f32.mrb[6].mxu1 }
 0x1c2   :  { %v436_v34 = vpop.f32.mrb[7].mxu1  ;;  %v5343_v35 = vpack.i.bf16 %v434_v33, %v428_v31  ;;  %v5349_v37 = vpack.c.bf16 %v434_v33, %v428_v31 }
 0x1c3   :  { %v5345_v36 = vpack.c.bf16 %v436_v34, %v430_v32  ;;  %v5476_v34 = vld [vmem:[%s5812_s4 + $0x10] sm:$0xff]  }
 0x1c4   :  { %4767 = vrot.lane.b32.xlu0 %v5343_v35, %s5138_s0 }
 0x1c5   :  { %v440_v38 = vpop.f32.mrb[8].mxu1 }
 0x1c6   :  { %v442_v39 = vpop.f32.mrb[9].mxu1 }
 0x1c9   :  { %v446_v40 = vpop.f32.mrb[10].mxu1 }
 0x1ca   :  { %v448_v41 = vpop.f32.mrb[11].mxu1  ;;  %v5351_v42 = vpack.i.bf16 %v446_v40, %v440_v38  ;;  %v5357_v44 = vpack.c.bf16 %v446_v40, %v440_v38 }
 0x1cb   :  { %v5353_v43 = vpack.c.bf16 %v448_v41, %v442_v39  ;;  %v3478_v39 = vunpack.c.l.bf16 %v5476_v34 }
 0x1cc   :  { %4772 = vrot.lane.b32.xlu1 %v5351_v42, %s5138_s0 }
 0x1cd   :  { %v452_v45 = vpop.f32.mrb[12].mxu1  ;;  %3884 = vmatprep.mubr.f32.mxu1 %v3478_v39 }
 0x1ce   :  { %v454_v46 = vpop.f32.mrb[13].mxu1 }
 0x1d1   :  { %v458_v47 = vpop.f32.mrb[14].mxu1 }
 0x1d2   :  { %v460_v48 = vpop.f32.mrb[15].mxu1  ;;  %v5359_v49 = vpack.i.bf16 %v458_v47, %v452_v45  ;;  %v5365_v51 = vpack.c.bf16 %v458_v47, %v452_v45 }
 0x1d3   :  { %v5361_v50 = vpack.c.bf16 %v460_v48, %v454_v46 }
 0x1d4   :  { %4777 = vrot.lane.b32.xlu1 %v5359_v49, %s5138_s0 }
 0x1d5   :  { %v464_v52 = vpop.f32.mrb[16].mxu1 }
 0x1d6   :  { %v466_v53 = vpop.f32.mrb[17].mxu1 }
 0x1d9   :  { %v470_v54 = vpop.f32.mrb[18].mxu1 }
 0x1da   :  { %v472_v55 = vpop.f32.mrb[19].mxu1  ;;  %v5367_v56 = vpack.i.bf16 %v470_v54, %v464_v52  ;;  %v5373_v58 = vpack.c.bf16 %v470_v54, %v464_v52 }
 0x1db   :  { %v5369_v57 = vpack.c.bf16 %v472_v55, %v466_v53 }
 0x1dc   :  { %4782 = vrot.lane.b32.xlu0 %v5367_v56, %s5138_s0 }
 0x1dd   :  { %v476_v59 = vpop.f32.mrb[20].mxu1 }
 0x1de   :  { %v478_v60 = vpop.f32.mrb[21].mxu1 }
 0x1e1   :  { %v482_v61 = vpop.f32.mrb[22].mxu1 }
 0x1e2   :  { %v484_v62 = vpop.f32.mrb[23].mxu1  ;;  %v5375_v63 = vpack.i.bf16 %v482_v61, %v476_v59  ;;  %v5381_v1 = vpack.c.bf16 %v482_v61, %v476_v59 }
 0x1e3   :  { %v5377_v0 = vpack.c.bf16 %v484_v62, %v478_v60 }
 0x1e4   :  { %4787 = vrot.lane.b32.xlu1 %v5375_v63, %s5138_s0 }
 0x1e5   :  { %v488_v2 = vpop.f32.mrb[24].mxu1 }
 0x1e6   :  { %v490_v3 = vpop.f32.mrb[25].mxu1 }
 0x1e9   :  { %v494_v4 = vpop.f32.mrb[26].mxu1 }
 0x1ea   :  { %v496_v5 = vpop.f32.mrb[27].mxu1  ;;  %v5383_v6 = vpack.i.bf16 %v494_v4, %v488_v2  ;;  %v5389_v8 = vpack.c.bf16 %v494_v4, %v488_v2 }
 0x1eb   :  { %v5385_v7 = vpack.c.bf16 %v496_v5, %v490_v3  ;;  %v3548_v5 = vld [vmem:[%s5812_s4 + $0x28] sm:$0xff]  }
 0x1ec   :  { %4792 = vrot.lane.b32.xlu0 %v5383_v6, %s5138_s0 }
 0x1ed   :  { %v500_v9 = vpop.f32.mrb[28].mxu1 }
 0x1ee   :  { %v502_v11 = vpop.f32.mrb[29].mxu1 }
 0x1f0   :  { %4802 = vrot.lane.b32.xlu0 %v5335_v28, %s5139_s29 }
 0x1f1   :  { %v506_v13 = vpop.f32.mrb[30].mxu1 }
 0x1f2   :  { %v508_v14 = vpop.f32.mrb[31].mxu1  ;;  %v5399_v15 = vpack.i.bf16 %v506_v13, %v500_v9  ;;  %v5407_v17 = vpack.c.bf16 %v506_v13, %v500_v9 }
 0x1f3   :  { %v5401_v16 = vpack.c.bf16 %v508_v14, %v502_v11  ;;  %v3487_v14 = vunpack.c.h.bf16 %v5394_v10 }
 0x1f4   :  { %4812 = vrot.lane.b32.xlu0 %v5351_v42, %s5139_s29  ;;  %4797 = vrot.lane.b32.xlu1 %v5399_v15, %s5138_s0 }
 0x1f8   :  { %4822 = vrot.lane.b32.xlu0 %v5367_v56, %s5139_s29  ;;  %4807 = vrot.lane.b32.xlu1 %v5343_v35, %s5139_s29 }
 0x1fc   :  { %4832 = vrot.lane.b32.xlu0 %v5383_v6, %s5139_s29  ;;  %4817 = vrot.lane.b32.xlu1 %v5359_v49, %s5139_s29 }
 0x200   :  { %4842 = vrot.lane.b32.xlu0 %v5335_v28, %s5140_s30  ;;  %4827 = vrot.lane.b32.xlu1 %v5375_v63, %s5139_s29 }
 0x204   :  { %4852 = vrot.lane.b32.xlu0 %v5351_v42, %s5140_s30  ;;  %4837 = vrot.lane.b32.xlu1 %v5399_v15, %s5139_s29 }
 0x208   :  { %4862 = vrot.lane.b32.xlu0 %v5367_v56, %s5140_s30  ;;  %4847 = vrot.lane.b32.xlu1 %v5343_v35, %s5140_s30 }
 0x20c   :  { %4872 = vrot.lane.b32.xlu0 %v5383_v6, %s5140_s30  ;;  %4857 = vrot.lane.b32.xlu1 %v5359_v49, %s5140_s30 }
 0x210   :  { %4882 = vrot.lane.b32.xlu0 %v5335_v28, %s5141_s10  ;;  %4867 = vrot.lane.b32.xlu1 %v5375_v63, %s5140_s30 }
 0x214   :  { %4892 = vrot.lane.b32.xlu0 %v5351_v42, %s5141_s10  ;;  %4877 = vrot.lane.b32.xlu1 %v5399_v15, %s5140_s30 }
 0x218   :  { %4902 = vrot.lane.b32.xlu0 %v5367_v56, %s5141_s10  ;;  %4887 = vrot.lane.b32.xlu1 %v5343_v35, %s5141_s10 }
 0x21c   :  { %4912 = vrot.lane.b32.xlu0 %v5383_v6, %s5141_s10  ;;  %4897 = vrot.lane.b32.xlu1 %v5359_v49, %s5141_s10 }
 0x220   :  { %4922 = vrot.lane.b32.xlu0 %v5335_v28, %s5142_s11  ;;  %4907 = vrot.lane.b32.xlu1 %v5375_v63, %s5141_s10 }
 0x224   :  { %4932 = vrot.lane.b32.xlu0 %v5351_v42, %s5142_s11  ;;  %4917 = vrot.lane.b32.xlu1 %v5399_v15, %s5141_s10 }
 0x228   :  { %4942 = vrot.lane.b32.xlu0 %v5367_v56, %s5142_s11  ;;  %4927 = vrot.lane.b32.xlu1 %v5343_v35, %s5142_s11 }
 0x22c   :  { %4952 = vrot.lane.b32.xlu0 %v5383_v6, %s5142_s11  ;;  %4937 = vrot.lane.b32.xlu1 %v5359_v49, %s5142_s11 }
 0x22e   :  { %v4763_v18 = vpop.permute.xlu0 %4762 }
 0x22f   :  { %v4765_v19 = vunpack.i.h.bf16 %v4763_v18  ;;  %v4764_v20 = vunpack.i.l.bf16 %v4763_v18  ;;  %v5498_v18 = vld [vmem:[%s5812_s4 + $0x30] sm:$0xff]  }
 0x230   :  { %4957 = vrot.lane.b32.xlu0 %v5335_v28, %s5143_s12  ;;  %4947 = vrot.lane.b32.xlu1 %v5375_v63, %s5142_s11 }
 0x231   :  { %v4406_v23 = vpack.c.bf16 %v4765_v19, %v4764_v20 }
 0x233   :  { %4407 = vmatprep.subr.bf16.mxu0 %v4406_v23 }
 0x234   :  { %4409 = vmatpush3.bf16.msra.mxu0 %v4406_v23  ;;  %4972 = vrot.lane.b32.xlu0 %v5343_v35, %s5143_s12 }
 0x235   :  { %4962 = vrot.lane.b32.xlu1 %v5399_v15, %s5142_s11 }
 0x236   :  { %v4768_v24 = vpop.permute.xlu0 %4767 }
 0x237   :  { %v4770_v25 = vunpack.i.h.bf16 %v4768_v24  ;;  %v4769_v26 = vunpack.i.l.bf16 %v4768_v24 }
 0x238   :  { %4982 = vrot.lane.b32.xlu0 %v5351_v42, %s5143_s12 }
 0x239   :  { %v4410_v22 = vpack.c.bf16 %v4770_v25, %v4769_v26  ;;  %4967 = vrot.lane.b32.xlu1 %v5335_v28, %s5144_s13  ;;  %v3491_v25 = vunpack.c.h.bf16 %v3548_v5 }
 0x23b   :  { %4411 = vmatprep.subr.bf16.mxu0 %v4410_v22 }
 0x23c   :  { %4413 = vmatpush3.bf16.msra.mxu0 %v4410_v22  ;;  %4992 = vrot.lane.b32.xlu0 %v5359_v49, %s5143_s12  ;;  %v3494_v22 = vunpack.c.l.bf16 %v5498_v18 }
 0x23d   :  { %4977 = vrot.lane.b32.xlu1 %v5343_v35, %s5144_s13 }
 0x23e   :  { %v4773_v27 = vpop.permute.xlu1 %4772 }
 0x23f   :  { %v4775_v31 = vunpack.i.h.bf16 %v4773_v27  ;;  %v4774_v32 = vunpack.i.l.bf16 %v4773_v27 }
 0x240   :  { %5002 = vrot.lane.b32.xlu0 %v5367_v56, %s5143_s12 }
 0x241   :  { %v4414_v33 = vpack.c.bf16 %v4775_v31, %v4774_v32  ;;  %4987 = vrot.lane.b32.xlu1 %v5351_v42, %s5144_s13 }
 0x243   :  { %4415 = vmatprep.subr.bf16.mxu0 %v4414_v33 }
 0x244   :  { %4417 = vmatpush3.bf16.msra.mxu0 %v4414_v33  ;;  %5012 = vrot.lane.b32.xlu0 %v5375_v63, %s5143_s12 }
 0x245   :  { %4997 = vrot.lane.b32.xlu1 %v5359_v49, %s5144_s13 }
 0x246   :  { %v4778_v28 = vpop.permute.xlu1 %4777 }
 0x247   :  { %v4780_v35 = vunpack.i.h.bf16 %v4778_v28  ;;  %v4779_v38 = vunpack.i.l.bf16 %v4778_v28 }
 0x248   :  { %5022 = vrot.lane.b32.xlu0 %v5383_v6, %s5143_s12 }
 0x249   :  { %v4418_v40 = vpack.c.bf16 %v4780_v35, %v4779_v38  ;;  %5007 = vrot.lane.b32.xlu1 %v5367_v56, %s5144_s13 }
 0x24b   :  { %4419 = vmatprep.subr.bf16.mxu0 %v4418_v40 }
 0x24c   :  { %4421 = vmatpush3.bf16.msra.mxu0 %v4418_v40  ;;  %5032 = vrot.lane.b32.xlu0 %v5399_v15, %s5143_s12 }
 0x24d   :  { %5017 = vrot.lane.b32.xlu1 %v5375_v63, %s5144_s13 }
 0x24e   :  { %v4783_v41 = vpop.permute.xlu0 %4782 }
 0x24f   :  { %v4785_v42 = vunpack.i.h.bf16 %v4783_v41  ;;  %v4784_v45 = vunpack.i.l.bf16 %v4783_v41 }
 0x251   :  { %v4422_v46 = vpack.c.bf16 %v4785_v42, %v4784_v45  ;;  %5027 = vrot.lane.b32.xlu1 %v5383_v6, %s5144_s13 }
 0x253   :  { %4423 = vmatprep.subr.bf16.mxu0 %v4422_v46 }
 0x254   :  { %4425 = vmatpush3.bf16.msra.mxu0 %v4422_v46 }
 0x255   :  { %5037 = vrot.lane.b32.xlu1 %v5399_v15, %s5144_s13  ;;  %v3490_v15 = vunpack.c.l.bf16 %v3548_v5 }
 0x256   :  { %v4788_v47 = vpop.permute.xlu1 %4787 }
 0x257   :  { %v4790_v48 = vunpack.i.h.bf16 %v4788_v47  ;;  %v4789_v49 = vunpack.i.l.bf16 %v4788_v47 }
 0x259   :  { %v4426_v52 = vpack.c.bf16 %v4790_v48, %v4789_v49 }
 0x25b   :  { %4427 = vmatprep.subr.bf16.mxu0 %v4426_v52 }
 0x25c   :  { %4429 = vmatpush3.bf16.msra.mxu0 %v4426_v52 }
 0x25e   :  { %v4793_v53 = vpop.permute.xlu0 %4792 }
 0x25f   :  { %v4795_v54 = vunpack.i.h.bf16 %v4793_v53  ;;  %v4794_v55 = vunpack.i.l.bf16 %v4793_v53 }
 0x261   :  { %v4430_v56 = vpack.c.bf16 %v4795_v54, %v4794_v55 }
 0x262   :  { %v4803_v59 = vpop.permute.xlu0 %4802 }
 0x263   :  { %4431 = vmatprep.subr.bf16.mxu0 %v4430_v56  ;;  %v4805_v62 = vunpack.i.h.bf16 %v4803_v59  ;;  %v4804_v63 = vunpack.i.l.bf16 %v4803_v59 }
 0x264   :  { %4433 = vmatpush3.bf16.msra.mxu0 %v4430_v56 }
 0x265   :  { %v4438_v11 = vpack.c.bf16 %v4805_v62, %v4804_v63 }
 0x266   :  { %v4813_v60 = vpop.permute.xlu0 %4812  ;;  %v4798_v61 = vpop.permute.xlu1 %4797 }
 0x267   :  { %v4800_v2 = vunpack.i.h.bf16 %v4798_v61  ;;  %v4799_v3 = vunpack.i.l.bf16 %v4798_v61  ;;  %v4815_v20 = vunpack.i.h.bf16 %v4813_v60  ;;  %v4814_v23 = vunpack.i.l.bf16 %v4813_v60 }
 0x269   :  { %v4434_v4 = vpack.c.bf16 %v4800_v2, %v4799_v3  ;;  %v4446_v27 = vpack.c.bf16 %v4815_v20, %v4814_v23  ;;  %v3550_v2 = vld [vmem:[%s5812_s4 + $0x38] sm:$0xff]  }
 0x26a   :  { %v4823_v6 = vpop.permute.xlu0 %4822  ;;  %v4808_v9 = vpop.permute.xlu1 %4807  ;;  %v3499_v20 = vunpack.c.h.bf16 %v3550_v2 }
 0x26b   :  { %v4810_v12 = vunpack.i.h.bf16 %v4808_v9  ;;  %v4809_v13 = vunpack.i.l.bf16 %v4808_v9  ;;  %4435 = vmatprep.subr.bf16.mxu0 %v4434_v4  ;;  %v4825_v28 = vunpack.i.h.bf16 %v4823_v6  ;;  %v4824_v35 = vunpack.i.l.bf16 %v4823_v6 }
 0x26c   :  { %4437 = vmatpush3.bf16.msra.mxu0 %v4434_v4  ;;  %v3495_v9 = vunpack.c.h.bf16 %v5498_v18 }
 0x26d   :  { %4439 = vmatprep.subr.bf16.mxu0 %v4438_v11  ;;  %v4442_v24 = vpack.c.bf16 %v4810_v12, %v4809_v13  ;;  %v4454_v41 = vpack.c.bf16 %v4825_v28, %v4824_v35  ;;  %v5518_v12 = vld [vmem:[%s5812_s4 + $0x40] sm:$0xff]  }
 0x26e   :  { %v4833_v19 = vpop.permute.xlu0 %4832  ;;  %v4818_v26 = vpop.permute.xlu1 %4817  ;;  %v3502_v18 = vunpack.c.l.bf16 %v5518_v12 }
 0x26f   :  { %3961 = vmatmul.mubr.f32.vlgmr.msra.gmra.mrb[16].mxu0 %v3487_v14  ;;  %v4820_v31 = vunpack.i.h.bf16 %v4818_v26  ;;  %v4819_v32 = vunpack.i.l.bf16 %v4818_v26  ;;  %v4835_v47 = vunpack.i.h.bf16 %v4833_v19  ;;  %v4834_v48 = vunpack.i.l.bf16 %v4833_v19 }
 0x270   :  { %4441 = vmatpush3.bf16.msra.mxu0 %v4438_v11  ;;  %3963 = vmatprep.mubr.f32.mxu0 %v3490_v15  ;;  %v3498_v11 = vunpack.c.l.bf16 %v3550_v2 }
 0x271   :  { %4443 = vmatprep.subr.bf16.mxu0 %v4442_v24  ;;  %v4450_v38 = vpack.c.bf16 %v4820_v31, %v4819_v32  ;;  %v4462_v54 = vpack.c.bf16 %v4835_v47, %v4834_v48 }
 0x272   :  { %v4843_v10 = vpop.permute.xlu0 %4842  ;;  %v4828_v39 = vpop.permute.xlu1 %4827 }
 0x273   :  { %3964 = vmatmul.mubr.f32.gmra.mrb[18].mxu0 %v3491_v25  ;;  %v4830_v42 = vunpack.i.h.bf16 %v4828_v39  ;;  %v4829_v45 = vunpack.i.l.bf16 %v4828_v39  ;;  %v4845_v60 = vunpack.i.h.bf16 %v4843_v10  ;;  %v4844_v61 = vunpack.i.l.bf16 %v4843_v10 }
 0x274   :  { %4445 = vmatpush3.bf16.msra.mxu0 %v4442_v24  ;;  %3998 = vmatprep.mubr.f32.mxu0 %v3494_v22 }
 0x275   :  { %4447 = vmatprep.subr.bf16.mxu0 %v4446_v27  ;;  %v4458_v49 = vpack.c.bf16 %v4830_v42, %v4829_v45  ;;  %v4470_v4 = vpack.c.bf16 %v4845_v60, %v4844_v61 }
 0x276   :  { %v4853_v33 = vpop.permute.xlu0 %4852  ;;  %v4838_v52 = vpop.permute.xlu1 %4837 }
 0x277   :  { %v4840_v55 = vunpack.i.h.bf16 %v4838_v52  ;;  %v4839_v56 = vunpack.i.l.bf16 %v4838_v52  ;;  %v4855_v14 = vunpack.i.h.bf16 %v4853_v33  ;;  %v4854_v15 = vunpack.i.l.bf16 %v4853_v33 }
 0x278   :  { %4449 = vmatpush3.bf16.msra.mxu0 %v4446_v27 }
 0x279   :  { %4451 = vmatprep.subr.bf16.mxu0 %v4450_v38  ;;  %v4466_v62 = vpack.c.bf16 %v4840_v55, %v4839_v56  ;;  %v4478_v25 = vpack.c.bf16 %v4855_v14, %v4854_v15  ;;  %v3503_v14 = vunpack.c.h.bf16 %v5518_v12  ;;  %v3552_v15 = vld [vmem:[%s5812_s4 + $0x48] sm:$0xff]  }
 0x27a   :  { %v5501_v40 = vpop.permute.xlu0 %4862  ;;  %v4848_v63 = vpop.permute.xlu1 %4847 }
 0x27b   :  { %v4850_v5 = vunpack.i.h.bf16 %v4848_v63  ;;  %v4849_v6 = vunpack.i.l.bf16 %v4848_v63  ;;  %v4865_v27 = vunpack.i.h.bf16 %v5501_v40  ;;  %v4864_v31 = vunpack.i.l.bf16 %v5501_v40 }
 0x27c   :  { %4453 = vmatpush3.bf16.msra.mxu0 %v4450_v38 }
 0x27d   :  { %4455 = vmatprep.subr.bf16.mxu0 %v4454_v41  ;;  %v4474_v19 = vpack.c.bf16 %v4850_v5, %v4849_v6  ;;  %v4486_v35 = vpack.c.bf16 %v4865_v27, %v4864_v31  ;;  %v5546_v31 = vld [vmem:[%s5812_s4 + $0x50] sm:$0xff]  }
 0x27e   :  { %v5503_v46 = vpop.permute.xlu0 %4872  ;;  %v4858_v23 = vpop.permute.xlu1 %4857 }
 0x27f   :  { %v4860_v26 = vunpack.i.h.bf16 %v4858_v23  ;;  %v4859_v22 = vunpack.i.l.bf16 %v4858_v23  ;;  %v4874_v42 = vunpack.i.l.bf16 %v5503_v46 }
 0x280   :  { %4457 = vmatpush3.bf16.msra.mxu0 %v4454_v41  ;;  %v4875_v41 = vunpack.i.h.bf16 %v5503_v46 }
 0x281   :  { %4459 = vmatprep.subr.bf16.mxu0 %v4458_v49  ;;  %v4482_v32 = vpack.c.bf16 %v4860_v26, %v4859_v22  ;;  %v3506_v26 = vunpack.c.l.bf16 %v3552_v15 }
 0x282   :  { %v5505_v53 = vpop.permute.xlu0 %4882  ;;  %v4868_v33 = vpop.permute.xlu1 %4867  ;;  %v4494_v40 = vpack.c.bf16 %v4875_v41, %v4874_v42  ;;  %v3510_v41 = vunpack.c.l.bf16 %v5546_v31 }
 0x283   :  { %v4870_v38 = vunpack.i.h.bf16 %v4868_v33  ;;  %v4869_v39 = vunpack.i.l.bf16 %v4868_v33  ;;  %v4885_v61 = vunpack.i.h.bf16 %v5505_v53 }
 0x284   :  { %4461 = vmatpush3.bf16.msra.mxu0 %v4458_v49 }
 0x285   :  { %4463 = vmatprep.subr.bf16.mxu0 %v4462_v54  ;;  %v4490_v47 = vpack.c.bf16 %v4870_v38, %v4869_v39  ;;  %v3507_v38 = vunpack.c.h.bf16 %v3552_v15 }
 0x286   :  { %v5507_v59 = vpop.permute.xlu0 %4892  ;;  %v4878_v48 = vpop.permute.xlu1 %4877 }
 0x287   :  { %v4880_v52 = vunpack.i.h.bf16 %v4878_v48  ;;  %v4895_v22 = vunpack.i.h.bf16 %v5507_v59  ;;  %v4894_v27 = vunpack.i.l.bf16 %v5507_v59 }
 0x288   :  { %4465 = vmatpush3.bf16.msra.mxu0 %v4462_v54  ;;  %v4879_v54 = vunpack.i.l.bf16 %v4878_v48 }
 0x289   :  { %4467 = vmatprep.subr.bf16.mxu0 %v4466_v62  ;;  %v4510_v59 = vpack.c.bf16 %v4895_v22, %v4894_v27 }
 0x28a   :  { %v5512_v3 = vpop.permute.xlu0 %4902  ;;  %v4888_v46 = vpop.permute.xlu1 %4887  ;;  %v4498_v2 = vpack.c.bf16 %v4880_v52, %v4879_v54  ;;  %v1809_v54 = vld [vmem:[%s5810_s3 + $0x8] sm:$0xff] }
 0x28c   :  { %4469 = vmatpush3.bf16.msra.mxu0 %v4466_v62  ;;  %v4884_v62 = vunpack.i.l.bf16 %v5505_v53  ;;  %v4889_v53 = vunpack.i.l.bf16 %v4888_v46 }
 0x28d   :  { %4471 = vmatprep.subr.bf16.mxu0 %v4470_v4 }
 0x28e   :  { %v5520_v13 = vpop.permute.xlu0 %4912 }
 0x28f   :  { %3999 = vmatmul.mubr.f32.vlgmr.msra.gmra.mrb[16].mxu0 %v3495_v9  ;;  %v4502_v9 = vpack.c.bf16 %v4885_v61, %v4884_v62  ;;  %v4905_v61 = vunpack.i.h.bf16 %v5512_v3  ;;  %v4904_v62 = vunpack.i.l.bf16 %v5512_v3 }
 0x290   :  { %4473 = vmatpush3.bf16.msra.mxu0 %v4470_v4  ;;  %4001 = vmatprep.mubr.f32.mxu0 %v3498_v11 }
 0x291   :  { %4475 = vmatprep.subr.bf16.mxu0 %v4474_v19 }
 0x292   :  { %v5523_v24 = vpop.permute.xlu0 %4922 }
 0x293   :  { %4002 = vmatmul.mubr.f32.gmra.mrb[18].mxu0 %v3499_v20 }
 0x294   :  { %4477 = vmatpush3.bf16.msra.mxu0 %v4474_v19  ;;  %4036 = vmatprep.mubr.f32.mxu0 %v3502_v18  ;;  %v4890_v19 = vunpack.i.h.bf16 %v4888_v46  ;;  %v4898_v18 = vpop.permute.xlu1 %4897 }
 0x295   :  { %4479 = vmatprep.subr.bf16.mxu0 %v4478_v25  ;;  %v4900_v48 = vunpack.i.h.bf16 %v4898_v18 }
 0x296   :  { %v5525_v10 = vpop.permute.xlu0 %4932 }
 0x298   :  { %4481 = vmatpush3.bf16.msra.mxu0 %v4478_v25  ;;  %v4908_v42 = vpop.permute.xlu1 %4907 }
 0x299   :  { %4483 = vmatprep.subr.bf16.mxu0 %v4482_v32  ;;  %v4909_v15 = vunpack.i.l.bf16 %v4908_v42 }
 0x29a   :  { %v5529_v28 = vpop.permute.xlu0 %4942 }
 0x29c   :  { %4485 = vmatpush3.bf16.msra.mxu0 %v4482_v32  ;;  %v4506_v32 = vpack.c.bf16 %v4890_v19, %v4889_v53 }
 0x29d   :  { %4487 = vmatprep.subr.bf16.mxu0 %v4486_v35 }
 0x29e   :  { %v5533_v45 = vpop.permute.xlu0 %4952 }
 0x2a0   :  { %4489 = vmatpush3.bf16.msra.mxu0 %v4486_v35 }
 0x2a1   :  { %4491 = vmatprep.subr.bf16.mxu0 %v4490_v47 }
 0x2a2   :  { %v4958_v49 = vpop.permute.xlu0 %4957 }
 0x2a3   :  { %v4960_v55 = vunpack.i.h.bf16 %v4958_v49  ;;  %v4959_v56 = vunpack.i.l.bf16 %v4958_v49 }
 0x2a4   :  { %4493 = vmatpush3.bf16.msra.mxu0 %v4490_v47 }
 0x2a5   :  { %v4342_v60 = vpack.c.bf16 %v4960_v55, %v4959_v56  ;;  %4495 = vmatprep.subr.bf16.mxu0 %v4494_v40  ;;  %v1810_v55 = vld [vmem:[%s5810_s3 + $0x18] sm:$0xff] }
 0x2a6   :  { %v4973_v63 = vpop.permute.xlu0 %4972  ;;  %v5041_v56 = vpack.i.bf16 %v1810_v55, %v1809_v54  ;;  %v3511_v55 = vunpack.c.h.bf16 %v5546_v31 }
 0x2a7   :  { %v4975_v4 = vunpack.i.h.bf16 %v4973_v63  ;;  %v4974_v5 = vunpack.i.l.bf16 %v4973_v63  ;;  %4343 = vmatprep.subr.bf16.mxu1 %v4342_v60 }
 0x2a8   :  { %4345 = vmatpush3.bf16.msra.mxu1 %v4342_v60  ;;  %4497 = vmatpush3.bf16.msra.mxu0 %v4494_v40  ;;  %v4899_v40 = vunpack.i.l.bf16 %v4898_v18 }
 0x2a9   :  { %v4346_v6 = vpack.c.bf16 %v4975_v4, %v4974_v5  ;;  %4499 = vmatprep.subr.bf16.mxu0 %v4498_v2  ;;  %5042 = vrot.lane.b32.xlu0 %v5041_v56, %s5143_s12  ;;  %v4918_v5 = vpop.permute.xlu1 %4917  ;;  %v3554_v56 = vld [vmem:[%s5812_s4 + $0x58] sm:$0xff]  }
 0x2aa   :  { %v4983_v11 = vpop.permute.xlu0 %4982  ;;  %v4514_v63 = vpack.c.bf16 %v4900_v48, %v4899_v40  ;;  %v3515_v31 = vunpack.c.h.bf16 %v3554_v56 }
 0x2ab   :  { %v4985_v20 = vunpack.i.h.bf16 %v4983_v11  ;;  %v4984_v23 = vunpack.i.l.bf16 %v4983_v11  ;;  %4347 = vmatprep.subr.bf16.mxu1 %v4346_v6 }
 0x2ac   :  { %4349 = vmatpush3.bf16.msra.mxu1 %v4346_v6  ;;  %4501 = vmatpush3.bf16.msra.mxu0 %v4498_v2 }
 0x2ad   :  { %v4350_v25 = vpack.c.bf16 %v4985_v20, %v4984_v23  ;;  %4503 = vmatprep.subr.bf16.mxu0 %v4502_v9  ;;  %v4915_v20 = vunpack.i.h.bf16 %v5520_v13  ;;  %v4928_v23 = vpop.permute.xlu1 %4927 }
 0x2ae   :  { %v4993_v12 = vpop.permute.xlu0 %4992  ;;  %v4929_v54 = vunpack.i.l.bf16 %v4928_v23 }
 0x2af   :  { %v4995_v33 = vunpack.i.h.bf16 %v4993_v12  ;;  %v4994_v35 = vunpack.i.l.bf16 %v4993_v12  ;;  %4351 = vmatprep.subr.bf16.mxu1 %v4350_v25  ;;  %4037 = vmatmul.mubr.f32.vlgmr.msra.gmra.mrb[16].mxu0 %v3503_v14  ;;  %v4910_v14 = vunpack.i.h.bf16 %v4908_v42  ;;  %v4924_v42 = vunpack.i.l.bf16 %v5523_v24 }
 0x2b0   :  { %4353 = vmatpush3.bf16.msra.mxu1 %v4350_v25  ;;  %4505 = vmatpush3.bf16.msra.mxu0 %v4502_v9  ;;  %v4518_v9 = vpack.c.bf16 %v4905_v61, %v4904_v62  ;;  %v4914_v25 = vunpack.i.l.bf16 %v5520_v13  ;;  %v4934_v61 = vunpack.i.l.bf16 %v5525_v10 }
 0x2b1   :  { %v4354_v39 = vpack.c.bf16 %v4995_v33, %v4994_v35  ;;  %4507 = vmatprep.subr.bf16.mxu0 %v4506_v32  ;;  %4039 = vmatprep.mubr.f32.mxu0 %v3506_v26  ;;  %v4522_v26 = vpack.c.bf16 %v4910_v14, %v4909_v15  ;;  %v4920_v33 = vunpack.i.h.bf16 %v4918_v5  ;;  %v4919_v35 = vunpack.i.l.bf16 %v4918_v5 }
 0x2b2   :  { %v5003_v47 = vpop.permute.xlu0 %5002 }
 0x2b3   :  { %v5005_v49 = vunpack.i.h.bf16 %v5003_v47  ;;  %v5004_v52 = vunpack.i.l.bf16 %v5003_v47  ;;  %4355 = vmatprep.subr.bf16.mxu1 %v4354_v39  ;;  %4040 = vmatmul.mubr.f32.gmra.mrb[18].mxu0 %v3507_v38  ;;  %v3479_v38 = vunpack.c.h.bf16 %v5476_v34  ;;  %v4530_v47 = vpack.c.bf16 %v4920_v33, %v4919_v35  ;;  %v5570_v34 = vld [vmem:[%s5812_s4] sm:$0xff]  }
 0x2b4   :  { %4357 = vmatpush3.bf16.msra.mxu1 %v4354_v39  ;;  %4509 = vmatpush3.bf16.msra.mxu0 %v4506_v32  ;;  %v4526_v32 = vpack.c.bf16 %v4915_v20, %v4914_v25  ;;  %v3546_v39 = vld [vmem:[%s5812_s4 + $0x18] sm:$0xff]  }
 0x2b5   :  { %v4358_v60 = vpack.c.bf16 %v5005_v49, %v5004_v52  ;;  %4511 = vmatprep.subr.bf16.mxu0 %v4510_v59  ;;  %4074 = vmatprep.mubr.f32.mxu0 %v3510_v41  ;;  %v4938_v41 = vpop.permute.xlu1 %4937  ;;  %v3482_v13 = vunpack.c.l.bf16 %v3546_v39  ;;  %v3483_v48 = vunpack.c.h.bf16 %v3546_v39  ;;  %v3470_v49 = vunpack.c.l.bf16 %v5570_v34  ;;  %v3557_v39 = vld [vmem:[%s5812_s4 + $0x70] sm:$0xff]  }
 0x2b6   :  { %v5013_v46 = vpop.permute.xlu0 %5012 }
 0x2b7   :  { %v5015_v2 = vunpack.i.h.bf16 %v5013_v46  ;;  %v5014_v4 = vunpack.i.l.bf16 %v5013_v46  ;;  %4359 = vmatprep.subr.bf16.mxu1 %v4358_v60  ;;  %v5586_v46 = vld [vmem:[%s5812_s4 + $0x60] sm:$0xff]  }
 0x2b8   :  { %4361 = vmatpush3.bf16.msra.mxu1 %v4358_v60  ;;  %4513 = vmatpush3.bf16.msra.mxu0 %v4510_v59  ;;  %v4925_v59 = vunpack.i.h.bf16 %v5523_v24  ;;  %v4930_v24 = vunpack.i.h.bf16 %v4928_v23  ;;  %v4935_v60 = vunpack.i.h.bf16 %v5525_v10  ;;  %v4940_v10 = vunpack.i.h.bf16 %v4938_v41 }
 0x2b9   :  { %v4362_v6 = vpack.c.bf16 %v5015_v2, %v5014_v4  ;;  %4515 = vmatprep.subr.bf16.mxu0 %v4514_v63  ;;  %v4948_v40 = vpop.permute.xlu1 %4947  ;;  %v4939_v4 = vunpack.i.l.bf16 %v4938_v41 }
 0x2ba   :  { %v5023_v11 = vpop.permute.xlu0 %5022  ;;  %v4534_v52 = vpack.c.bf16 %v4925_v59, %v4924_v42  ;;  %v4538_v62 = vpack.c.bf16 %v4930_v24, %v4929_v54  ;;  %v4542_v2 = vpack.c.bf16 %v4935_v60, %v4934_v61  ;;  %v4950_v14 = vunpack.i.h.bf16 %v4948_v40 }
 0x2bb   :  { %v5025_v19 = vunpack.i.h.bf16 %v5023_v11  ;;  %v5024_v53 = vunpack.i.l.bf16 %v5023_v11  ;;  %4363 = vmatprep.subr.bf16.mxu1 %v4362_v6 }
 0x2bc   :  { %4365 = vmatpush3.bf16.msra.mxu1 %v4362_v6  ;;  %4517 = vmatpush3.bf16.msra.mxu0 %v4514_v63  ;;  %v4944_v6 = vunpack.i.l.bf16 %v5529_v28 }
 0x2bd   :  { %v4366_v3 = vpack.c.bf16 %v5025_v19, %v5024_v53  ;;  %4519 = vmatprep.subr.bf16.mxu0 %v4518_v9  ;;  %v4963_v63 = vpop.permute.xlu1 %4962  ;;  %v4955_v19 = vunpack.i.h.bf16 %v5533_v45 }
 0x2be   :  { %v5033_v18 = vpop.permute.xlu0 %5032  ;;  %v4965_v20 = vunpack.i.h.bf16 %v4963_v63  ;;  %v4964_v23 = vunpack.i.l.bf16 %v4963_v63 }
 0x2bf   :  { %v5035_v22 = vunpack.i.h.bf16 %v5033_v18  ;;  %v5034_v27 = vunpack.i.l.bf16 %v5033_v18  ;;  %4367 = vmatprep.subr.bf16.mxu1 %v4366_v3  ;;  %v3471_v18 = vunpack.c.h.bf16 %v5570_v34 }
 0x2c0   :  { %4369 = vmatpush3.bf16.msra.mxu1 %v4366_v3  ;;  %4521 = vmatpush3.bf16.msra.mxu0 %v4518_v9  ;;  %v4546_v9 = vpack.c.bf16 %v4940_v10, %v4939_v4 }
 0x2c1   :  { %v4370_v12 = vpack.c.bf16 %v5035_v22, %v5034_v27  ;;  %4523 = vmatprep.subr.bf16.mxu0 %v4522_v26  ;;  %v4968_v5 = vpop.permute.xlu1 %4967 }
 0x2c2   :  { %v4970_v25 = vunpack.i.h.bf16 %v4968_v5 }
 0x2c3   :  { %4371 = vmatprep.subr.bf16.mxu1 %v4370_v12 }
 0x2c4   :  { %4373 = vmatpush3.bf16.msra.mxu1 %v4370_v12  ;;  %4525 = vmatpush3.bf16.msra.mxu0 %v4522_v26  ;;  %v4969_v26 = vunpack.i.l.bf16 %v4968_v5  ;;  %v3556_v12 = vld [vmem:[%s5812_s4 + $0x68] sm:$0xff]   ;;  %v3558_v5 = vld [vmem:[%s5812_s4 + $0x78] sm:$0xff]  }
 0x2c5   :  { %4375 = vmatprep.subr.bf16.mxu1 %v5341_v30  ;;  %4527 = vmatprep.subr.bf16.mxu0 %v4526_v32  ;;  %v4978_v15 = vpop.permute.xlu1 %4977 }
 0x2c6   :  { %v4980_v33 = vunpack.i.h.bf16 %v4978_v15  ;;  %v4979_v35 = vunpack.i.l.bf16 %v4978_v15 }
 0x2c7   :  { %3885 = vmatmul.mubr.f32.vlgmr.msra.gmra.mrb[32].mxu1 %v3479_v38  ;;  %v3522_v38 = vunpack.c.l.bf16 %v3556_v12 }
 0x2c8   :  { %4377 = vmatpush3.bf16.msra.mxu1 %v5341_v30  ;;  %4529 = vmatpush3.bf16.msra.mxu0 %v4526_v32  ;;  %v3514_v30 = vunpack.c.l.bf16 %v3554_v56  ;;  %v4566_v32 = vpack.c.bf16 %v4970_v25, %v4969_v26 }
 0x2c9   :  { %4379 = vmatprep.subr.bf16.mxu1 %v5349_v37  ;;  %4531 = vmatprep.subr.bf16.mxu0 %v4530_v47 }
 0x2ca   :  { %3887 = vmatprep.mubr.f32.mxu1 %v3482_v13  ;;  %v4570_v13 = vpack.c.bf16 %v4980_v33, %v4979_v35 }
 0x2cb   :  { %3888 = vmatmul.mubr.f32.gmra.mrb[34].mxu1 %v3483_v48  ;;  %v3526_v48 = vunpack.c.l.bf16 %v3557_v39 }
 0x2cc   :  { %4381 = vmatpush3.bf16.msra.mxu1 %v5349_v37  ;;  %4533 = vmatpush3.bf16.msra.mxu0 %v4530_v47  ;;  %v3518_v37 = vunpack.c.l.bf16 %v5586_v46  ;;  %v3523_v47 = vunpack.c.h.bf16 %v3556_v12 }
 0x2cd   :  { %4383 = vmatprep.subr.bf16.mxu1 %v5357_v44  ;;  %4535 = vmatprep.subr.bf16.mxu0 %v4534_v52 }
 0x2ce   :  { %3922 = vmatprep.mubr.f32.mxu1 %v3470_v49 }
 0x2cf   :  { %4075 = vmatmul.mubr.f32.vlgmr.msra.gmra.mrb[16].mxu0 %v3511_v55 }
 0x2d0   :  { %4385 = vmatpush3.bf16.msra.mxu1 %v5357_v44  ;;  %4537 = vmatpush3.bf16.msra.mxu0 %v4534_v52  ;;  %v4945_v44 = vunpack.i.h.bf16 %v5529_v28  ;;  %v4954_v28 = vunpack.i.l.bf16 %v5533_v45 }
 0x2d1   :  { %4387 = vmatprep.subr.bf16.mxu1 %v5365_v51  ;;  %4539 = vmatprep.subr.bf16.mxu0 %v4538_v62 }
 0x2d2   :  { %4077 = vmatprep.mubr.f32.mxu0 %v3514_v30  ;;  %v4550_v11 = vpack.c.bf16 %v4945_v44, %v4944_v6  ;;  %v4558_v3 = vpack.c.bf16 %v4955_v19, %v4954_v28  ;;  %v3527_v44 = vunpack.c.h.bf16 %v3557_v39  ;;  %v3530_v6 = vunpack.c.l.bf16 %v3558_v5 }
 0x2d3   :  { %4078 = vmatmul.mubr.f32.gmra.mrb[18].mxu0 %v3515_v31 }
 0x2d4   :  { %4389 = vmatpush3.bf16.msra.mxu1 %v5365_v51  ;;  %4541 = vmatpush3.bf16.msra.mxu0 %v4538_v62  ;;  %v4949_v51 = vunpack.i.l.bf16 %v4948_v40 }
 0x2d5   :  { %4391 = vmatprep.subr.bf16.mxu1 %v5373_v58  ;;  %4543 = vmatprep.subr.bf16.mxu0 %v4542_v2 }
 0x2d6   :  { %4112 = vmatprep.mubr.f32.mxu0 %v3518_v37  ;;  %v4554_v53 = vpack.c.bf16 %v4950_v14, %v4949_v51 }
 0x2d8   :  { %4393 = vmatpush3.bf16.msra.mxu1 %v5373_v58  ;;  %4545 = vmatpush3.bf16.msra.mxu0 %v4542_v2  ;;  %v3544_v58 = vld [vmem:[%s5812_s4 + $0x8] sm:$0xff]  }
 0x2d9   :  { %4395 = vmatprep.subr.bf16.mxu1 %v5381_v1  ;;  %4547 = vmatprep.subr.bf16.mxu0 %v4546_v9  ;;  %v3474_v45 = vunpack.c.l.bf16 %v3544_v58  ;;  %v3475_v22 = vunpack.c.h.bf16 %v3544_v58 }
 0x2dc   :  { %4397 = vmatpush3.bf16.msra.mxu1 %v5381_v1  ;;  %4549 = vmatpush3.bf16.msra.mxu0 %v4546_v9  ;;  %v4988_v1 = vpop.permute.xlu1 %4987  ;;  %v3559_v9 = vld [vmem:[%s5812_s4 + $0x80] sm:$0xff]  }
 0x2dd   :  { %4399 = vmatprep.subr.bf16.mxu1 %v5389_v8  ;;  %4551 = vmatprep.subr.bf16.mxu0 %v4550_v11  ;;  %v4990_v59 = vunpack.i.h.bf16 %v4988_v1  ;;  %v4989_v42 = vunpack.i.l.bf16 %v4988_v1  ;;  %v3534_v14 = vunpack.c.l.bf16 %v3559_v9 }
 0x2df   :  { %v4574_v34 = vpack.c.bf16 %v4990_v59, %v4989_v42 }
 0x2e0   :  { %4401 = vmatpush3.bf16.msra.mxu1 %v5389_v8  ;;  %4553 = vmatpush3.bf16.msra.mxu0 %v4550_v11  ;;  %v4562_v8 = vpack.c.bf16 %v4965_v20, %v4964_v23  ;;  %v4998_v27 = vpop.permute.xlu1 %4997  ;;  %v3531_v11 = vunpack.c.h.bf16 %v3558_v5 }
 0x2e1   :  { %4403 = vmatprep.subr.bf16.mxu1 %v5407_v17  ;;  %4555 = vmatprep.subr.bf16.mxu0 %v4554_v53  ;;  %v5000_v40 = vunpack.i.h.bf16 %v4998_v27  ;;  %v4999_v49 = vunpack.i.l.bf16 %v4998_v27 }
 0x2e3   :  { %v4578_v24 = vpack.c.bf16 %v5000_v40, %v4999_v49 }
 0x2e4   :  { %4405 = vmatpush3.bf16.msra.mxu1 %v5407_v17  ;;  %4557 = vmatpush3.bf16.msra.mxu0 %v4554_v53  ;;  %v3519_v17 = vunpack.c.h.bf16 %v5586_v46  ;;  %v5008_v41 = vpop.permute.xlu1 %5007 }
 0x2e5   :  { %4559 = vmatprep.subr.bf16.mxu0 %v4558_v3  ;;  %v5010_v54 = vunpack.i.h.bf16 %v5008_v41  ;;  %v5009_v55 = vunpack.i.l.bf16 %v5008_v41 }
 0x2e7   :  { %3923 = vmatmul.mubr.f32.vlgmr.msra.gmra.mrb[32].mxu1 %v3471_v18  ;;  %v4582_v30 = vpack.c.bf16 %v5010_v54, %v5009_v55 }
 0x2e8   :  { %4561 = vmatpush3.bf16.msra.mxu0 %v4558_v3  ;;  %3925 = vmatprep.mubr.f32.mxu1 %v3474_v45  ;;  %v5018_v52 = vpop.permute.xlu1 %5017 }
 0x2e9   :  { %4563 = vmatprep.subr.bf16.mxu0 %v4562_v8  ;;  %v5020_v60 = vunpack.i.h.bf16 %v5018_v52  ;;  %v5019_v61 = vunpack.i.l.bf16 %v5018_v52 }
 0x2eb   :  { %3926 = vmatmul.mubr.f32.gmra.mrb[34].mxu1 %v3475_v22  ;;  %v4586_v62 = vpack.c.bf16 %v5020_v60, %v5019_v61 }
 0x2ec   :  { %4565 = vmatpush3.bf16.msra.mxu0 %v4562_v8  ;;  %v5028_v56 = vpop.permute.xlu1 %5027 }
 0x2ed   :  { %4567 = vmatprep.subr.bf16.mxu0 %v4566_v32  ;;  %v5030_v31 = vunpack.i.h.bf16 %v5028_v56  ;;  %v5029_v46 = vunpack.i.l.bf16 %v5028_v56 }
 0x2ef   :  { %4113 = vmatmul.mubr.f32.vlgmr.msra.gmra.mrb[16].mxu0 %v3519_v17  ;;  %v4590_v37 = vpack.c.bf16 %v5030_v31, %v5029_v46 }
 0x2f0   :  { %4569 = vmatpush3.bf16.msra.mxu0 %v4566_v32  ;;  %4115 = vmatprep.mubr.f32.mxu0 %v3522_v38  ;;  %v5038_v63 = vpop.permute.xlu1 %5037 }
 0x2f1   :  { %4571 = vmatprep.subr.bf16.mxu0 %v4570_v13  ;;  %v5040_v2 = vunpack.i.h.bf16 %v5038_v63  ;;  %v5039_v10 = vunpack.i.l.bf16 %v5038_v63 }
 0x2f3   :  { %4116 = vmatmul.mubr.f32.gmra.mrb[18].mxu0 %v3523_v47  ;;  %v4594_v4 = vpack.c.bf16 %v5040_v2, %v5039_v10 }
 0x2f4   :  { %4573 = vmatpush3.bf16.msra.mxu0 %v4570_v13  ;;  %4150 = vmatprep.mubr.f32.mxu0 %v3526_v48 }
 0x2f5   :  { %4575 = vmatprep.subr.bf16.mxu0 %v4574_v34 }
 0x2f8   :  { %4577 = vmatpush3.bf16.msra.mxu0 %v4574_v34 }
 0x2f9   :  { %4579 = vmatprep.subr.bf16.mxu0 %v4578_v24 }
 0x2fc   :  { %4581 = vmatpush3.bf16.msra.mxu0 %v4578_v24 }
 0x2fd   :  { %4583 = vmatprep.subr.bf16.mxu0 %v4582_v30 }
 0x300   :  { %4585 = vmatpush3.bf16.msra.mxu0 %v4582_v30 }
 0x301   :  { %4587 = vmatprep.subr.bf16.mxu0 %v4586_v62 }
 0x304   :  { %4589 = vmatpush3.bf16.msra.mxu0 %v4586_v62 }
 0x305   :  { %4591 = vmatprep.subr.bf16.mxu0 %v4590_v37 }
 0x308   :  { %4593 = vmatpush3.bf16.msra.mxu0 %v4590_v37 }
 0x309   :  { %4595 = vmatprep.subr.bf16.mxu0 %v4594_v4 }
 0x30c   :  { %4597 = vmatpush3.bf16.msra.mxu0 %v4594_v4 }
 0x30d   :  { %4599 = vmatprep.subr.bf16.mxu0 %v5337_v29 }
 0x30f   :  { %4151 = vmatmul.mubr.f32.vlgmr.msra.gmra.mrb[16].mxu0 %v3527_v44  ;;  %v5651_v44 = vld [vmem:[%s5813_s8] ss:$0 sm:$0xff] }
 0x310   :  { %4601 = vmatpush3.bf16.msra.mxu0 %v5337_v29  ;;  %4153 = vmatprep.mubr.f32.mxu0 %v3530_v6  ;;  %v3560_v29 = vld [vmem:[%s5812_s4 + $0x88] sm:$0xff]  }
 0x311   :  { %4603 = vmatprep.subr.bf16.mxu0 %v5345_v36 }
 0x313   :  { %4154 = vmatmul.mubr.f32.gmra.mrb[18].mxu0 %v3531_v11 }
 0x314   :  { %4605 = vmatpush3.bf16.msra.mxu0 %v5345_v36  ;;  %4188 = vmatprep.mubr.f32.mxu0 %v3534_v14  ;;  %v3535_v36 = vunpack.c.h.bf16 %v3559_v9 }
 0x315   :  { %4607 = vmatprep.subr.bf16.mxu0 %v5353_v43 }
 0x318   :  { %4609 = vmatpush3.bf16.msra.mxu0 %v5353_v43  ;;  %v3538_v43 = vunpack.c.l.bf16 %v3560_v29 }
 0x319   :  { %4611 = vmatprep.subr.bf16.mxu0 %v5361_v50 }
 0x31b   :  { %v5043_v19 = vpop.permute.xlu0 %5042 }
 0x31c   :  { %4613 = vmatpush3.bf16.msra.mxu0 %v5361_v50  ;;  %v3539_v50 = vunpack.c.h.bf16 %v3560_v29  ;;  %v5044_v28 = vunpack.i.l.bf16 %v5043_v19  ;;  %v5656_v29 = vld [vmem:[%s5813_s8 + $0x1] ss:$0 sm:$0xff]  ;;  %s5147_s8 = smov 120  }
 0x31d   :  { %4615 = vmatprep.subr.bf16.mxu0 %v5369_v57 }
 0x320   :  { %4617 = vmatpush3.bf16.msra.mxu0 %v5369_v57 }
 0x321   :  { %4619 = vmatprep.subr.bf16.mxu0 %v5377_v0 }
 0x324   :  { %4621 = vmatpush3.bf16.msra.mxu0 %v5377_v0 }
 0x325   :  { %4623 = vmatprep.subr.bf16.mxu0 %v5385_v7 }
 0x328   :  { %4625 = vmatpush3.bf16.msra.mxu0 %v5385_v7  ;;  %v5045_v7 = vunpack.i.h.bf16 %v5043_v19 }
 0x329   :  { %4627 = vmatprep.subr.bf16.mxu0 %v5401_v16 }
 0x32a   :  { %v4630_v53 = vpack.c.bf16 %v5045_v7, %v5044_v28 }
 0x32c   :  { %4629 = vmatpush3.bf16.msra.mxu0 %v5401_v16  ;;  %4631 = vmatprep.subr.bf16.mxu1 %v4630_v53 }
 0x32d   :  { %4633 = vmatpush3.bf16.msra.mxu1 %v4630_v53 }
 0x32f   :  { %4189 = vmatmul.mubr.f32.vlgmr.msra.gmra.mrb[16].mxu0 %v3535_v36 }
 0x330   :  { %4191 = vmatprep.mubr.f32.mxu0 %v3538_v43 }
 0x333   :  { %4192 = vmatmul.mubr.f32.gmra.mrb[18].mxu0 %v3539_v50 }
 0x3ba   :  { %v3924_v57 = vpop.f32.mrb[32].mxu1 }
 0x3bb   :  { %v743_v0 = vpop.f32.mrb[33].mxu1 }
 0x3be   :  { %v3927_v51 = vpop.f32.mrb[34].mxu1 }
 0x3bf   :  { %v753_v15 = vpop.f32.mrb[35].mxu1 }
 0x402   :  { %v4190_v58 = vpop.f32.mrb[16].mxu0 }
 0x403   :  { %v4688_v1 = vadd.f32 %v4190_v58, %v3924_v57  ;;  %v1713_v3 = vpop.f32.mrb[17].mxu0 }
 0x404   :  { %v4689_v20 = vadd.f32 %v1713_v3, %v743_v0 }
 0x405   :  { %v1737_v16 = vsel %vm57_vm0, %v4688_v1, 0.0 }
 0x406   :  { %v1736_v23 = vsel %vm57_vm0, %v4689_v20, 0.0  ;;  %v4193_v18 = vpop.f32.mrb[18].mxu0 }
 0x407   :  { %v1738_v45 = vadd.f32 %v1737_v16, %v1736_v23  ;;  %v4690_v8 = vadd.f32 %v4193_v18, %v3927_v51  ;;  %v1723_v25 = vpop.f32.mrb[19].mxu0  ;;  %v5145_v23 = vmov 0.0|0.0  }
 0x408   :  { %v4691_v26 = vadd.f32 %v1723_v25, %v753_v15  ;;  %4634 = vmatprep.subr.bf16.mxu1 %v5145_v23 }
 0x409   :  { %v1741_v12 = vsel %vm57_vm0, %v4690_v8, 0.0 }
 0x40a   :  { %v1739_v22 = vsel %vm57_vm0, %v4691_v26, 0.0 }
 0x40b   :  { %v1740_v27 = vadd.f32 %v1739_v22, %v1738_v45 }
 0x40d   :  { %v1742_v32 = vadd.f32 %v1741_v12, %v1740_v27 }
 0x40f   :  { %v1743_v33 = vrot.slane %v1742_v32, 4 }
 0x411   :  { %v1744_v35 = vadd.f32 %v1743_v33, %v1742_v32  ;;  %v5136_v32 = vld [vmem:[%s5810_s3 + $0x8] sm:$0xff] }
 0x413   :  { %v1745_v17 = vrot.slane %v1744_v35, 2 }
 0x415   :  { %v1746_v38 = vadd.f32 %v1745_v17, %v1744_v35 }
 0x417   :  { %v1747_v39 = vrot.slane %v1746_v38, 1 }
 0x419   :  { %v1748_v41 = vadd.f32 %v1747_v39, %v1746_v38 }
 0x41b   :  { %v1750_v13 = vmul.f32 0.03125, %v1748_v41 }
 0x41d   :  { %v1751_v59 = vsub.f32 %v4689_v20, %v1750_v13  ;;  %v1752_v42 = vsub.f32 %v4688_v1, %v1750_v13  ;;  %v1753_v47 = vsub.f32 %v4691_v26, %v1750_v13  ;;  %v1754_v48 = vsub.f32 %v4690_v8, %v1750_v13 }
 0x41f   :  { %v1755_v34 = vmul.f32 %v1751_v59, %v1751_v59  ;;  %v1756_v40 = vmul.f32 %v1752_v42, %v1752_v42  ;;  %v1757_v49 = vmul.f32 %v1753_v47, %v1753_v47  ;;  %v1758_v52 = vmul.f32 %v1754_v48, %v1754_v48 }
 0x421   :  { %v1759_v24 = vsel %vm57_vm0, %v1755_v34, 0.0  ;;  %v1760_v54 = vsel %vm57_vm0, %v1756_v40, 0.0  ;;  %v1762_v56 = vsel %vm57_vm0, %v1757_v49, 0.0  ;;  %v1764_v60 = vsel %vm57_vm0, %v1758_v52, 0.0 }
 0x422   :  { %v1761_v55 = vadd.f32 %v1760_v54, %v1759_v24 }
 0x424   :  { %v1763_v30 = vadd.f32 %v1762_v56, %v1761_v55 }
 0x426   :  { %v1765_v61 = vadd.f32 %v1764_v60, %v1763_v30  ;;  %v3442_v30 = vld [vmem:[%s5814_s5 + $0x8] sm:$0xff]  }
 0x428   :  { %v1766_v62 = vrot.slane %v1765_v61, 4 }
 0x42a   :  { %v1767_v31 = vadd.f32 %v1766_v62, %v1765_v61 }
 0x42c   :  { %v1768_v46 = vrot.slane %v1767_v31, 2 }
 0x42e   :  { %v1769_v63 = vadd.f32 %v1768_v46, %v1767_v31  ;;  %v2086_v46 = vunpack.c.l.bf16 %v3442_v30 }
 0x430   :  { %v1770_v37 = vrot.slane %v1769_v63, 1 }
 0x432   :  { %v1771_v2 = vadd.f32 %v1770_v37, %v1769_v63 }
 0x434   :  { %v1772_v10 = vmul.f32 0.03125, %v1771_v2 }
 0x436   :  { %v1775_v4 = vadd.f32 1e-05, %v1772_v10 }
 0x438   :  { %5126 = vrsqrt.f32 %v1775_v4 }
 0x442   :  { %v5127_v5 = vpop.eup %5126 }
 0x443   :  { %v1778_v6 = vmul.f32 %v5127_v5, %v1752_v42  ;;  %v1779_v9 = vmul.f32 %v5127_v5, %v1753_v47  ;;  %v1777_v11 = vmul.f32 %v5127_v5, %v1751_v59  ;;  %v1780_v14 = vmul.f32 %v5127_v5, %v1754_v48  ;;  %v3541_v59 = vld [vmem:[%s5814_s5] sm:$0xff]  }
 0x444   :  { %v3543_v47 = vunpack.c.h.bf16 %v3541_v59  ;;  %v3542_v52 = vunpack.c.l.bf16 %v3541_v59 }
 0x445   :  { %v1787_v36 = vmul.f32 %v5651_v44, %v1779_v9  ;;  %v1785_v43 = vmul.f32 %v5651_v44, %v1777_v11  ;;  %v1786_v50 = vmul.f32 %v5651_v44, %v1778_v6  ;;  %v1788_v57 = vmul.f32 %v5651_v44, %v1780_v14 }
 0x446   :  { %v2175_v11 = vunpack.c.h.bf16 %v3442_v30 }
 0x447   :  { %v1793_v0 = vadd.f32 %v5656_v29, %v1785_v43  ;;  %v1794_v51 = vadd.f32 %v5656_v29, %v1786_v50  ;;  %v1795_v15 = vadd.f32 %v5656_v29, %v1787_v36  ;;  %v1796_v19 = vadd.f32 %v5656_v29, %v1788_v57  ;;  %v3446_v57 = vld [vmem:[%s5814_s5 + $0x10] sm:$0xff]  }
 0x449   :  { %vm1797_vm4 = vcmp.gt.f32.partialorder %v1793_v0, 0.0  ;;  %v1801_v7 = vmul.f32 0.2, %v1793_v0  ;;  %vm1798_vm5 = vcmp.gt.f32.partialorder %v1794_v51, 0.0  ;;  %v1802_v28 = vmul.f32 0.2, %v1794_v51 }
 0x44a   :  { %vm1799_vm6 = vcmp.gt.f32.partialorder %v1795_v15, 0.0  ;;  %v1803_v53 = vmul.f32 0.2, %v1795_v15  ;;  %v1804_v3 = vmul.f32 0.2, %v1796_v19  ;;  %vm1800_vm7 = vcmp.gt.f32.partialorder %v1796_v19, 0.0 }
 0x44b   :  { %v1805_v58 = vsel %vm1797_vm4, %v1793_v0, %v1801_v7  ;;  %v1806_v1 = vsel %vm1798_vm5, %v1794_v51, %v1802_v28  ;;  %v2264_v7 = vunpack.c.l.bf16 %v3446_v57 }
 0x44c   :  { %4198 = vmatprep.mubr.msk.f32.mxu1 %vm57_vm0, %v1805_v58  ;;  %v1807_v20 = vsel %vm1799_vm6, %v1795_v15, %v1803_v53  ;;  %v1808_v16 = vsel %vm1800_vm7, %v1796_v19, %v1804_v3 }
 0x44d   :  { %4199 = vmatmul.mubr.msk.f32.vlgmr.msra.gmra.mrb[36].mxu1 %vm57_vm0, %v1806_v1 }
 0x44e   :  { %4201 = vmatprep.mubr.msk.f32.mxu1 %vm57_vm0, %v1807_v20 }
 0x451   :  { %4202 = vmatmul.mubr.msk.f32.gmra.mrb[38].mxu1 %vm57_vm0, %v1808_v16  ;;  %vm1937_vm0 = vcmask 261120  }
 0x452   :  { %4212 = vmatprep.mubr.msk.f32.mxu1 %vm5146_vm8, %v5137_v21 }
 0x520   :  { %v4200_v18 = vpop.f32.mrb[36].mxu1 }
 0x521   :  { %v1897_v45 = vpop.f32.mrb[37].mxu1 }
 0x522   :  { %v5046_v8 = vpack.i.bf16 %v4200_v18, %v1897_v45  ;;  %v4641_v26 = vpack.c.bf16 %v4200_v18, %v1897_v45  ;;  %v2353_v45 = vunpack.c.h.bf16 %v3446_v57 }
 0x524   :  { %5047 = vrot.lane.b32.xlu1 %v5046_v8, %s5147_s8  ;;  %v4203_v25 = vpop.f32.mrb[38].mxu1 }
 0x525   :  { %v1907_v22 = vpop.f32.mrb[39].mxu1 }
 0x526   :  { %v5051_v27 = vpack.i.bf16 %v4203_v25, %v1907_v22  ;;  %v4644_v12 = vpack.c.bf16 %v4203_v25, %v1907_v22 }
 0x528   :  { %5057 = vrot.lane.b32.xlu1 %v5046_v8, %s5143_s12  ;;  %5052 = vrot.lane.b32.xlu0 %v5051_v27, %s5147_s8 }
 0x52c   :  { %5067 = vrot.lane.b32.xlu1 %v5046_v8, %s5148_s15  ;;  %5062 = vrot.lane.b32.xlu0 %v5051_v27, %s5143_s12 }
 0x530   :  { %5077 = vrot.lane.b32.xlu1 %v5046_v8, %s5138_s0  ;;  %5072 = vrot.lane.b32.xlu0 %v5051_v27, %s5148_s15 }
 0x534   :  { %5087 = vrot.lane.b32.xlu1 %v5046_v8, %s5149_s16  ;;  %5082 = vrot.lane.b32.xlu0 %v5051_v27, %s5138_s0 }
 0x538   :  { %5097 = vrot.lane.b32.xlu1 %v5046_v8, %s5139_s29  ;;  %5092 = vrot.lane.b32.xlu0 %v5051_v27, %s5149_s16 }
 0x53c   :  { %5107 = vrot.lane.b32.xlu1 %v5046_v8, %s5150_s17  ;;  %5102 = vrot.lane.b32.xlu0 %v5051_v27, %s5139_s29 }
 0x540   :  { %5117 = vrot.lane.b32.xlu1 %v5046_v8, %s5140_s30  ;;  %5112 = vrot.lane.b32.xlu0 %v5051_v27, %s5150_s17 }
 0x544   :  { %5122 = vrot.lane.b32.xlu0 %v5051_v27, %s5140_s30  ;;  %2730 = vrot.lane.b32.xlu1 %v5651_v44, %s5143_s12  ;;  %v3450_v27 = vld [vmem:[%s5814_s5 + $0x18] sm:$0xff]  }
 0x548   :  { %2735 = vrot.lane.b32.xlu0 %v5656_v29, %s5143_s12  ;;  %2743 = vrot.lane.b32.xlu1 %v5136_v32, %s5151_s1 }
 0x596   :  { %v5048_v33 = vpop.permute.xlu1 %5047 }
 0x597   :  { %v5050_v35 = vunpack.i.h.bf16 %v5048_v33  ;;  %v5049_v17 = vunpack.i.l.bf16 %v5048_v33 }
 0x599   :  { %v4635_v38 = vpack.c.bf16 %v5050_v35, %v5049_v17  ;;  %v2442_v17 = vunpack.c.l.bf16 %v3450_v27 }
 0x59a   :  { %v5053_v39 = vpop.permute.xlu0 %5052  ;;  %v5058_v48 = vpop.permute.xlu1 %5057 }
 0x59b   :  { %v5055_v41 = vunpack.i.h.bf16 %v5053_v39  ;;  %v5054_v13 = vunpack.i.l.bf16 %v5053_v39  ;;  %4636 = vmatpush3.bf16.msra.mxu1 %v4635_v38  ;;  %v5060_v34 = vunpack.i.h.bf16 %v5058_v48  ;;  %v5059_v40 = vunpack.i.l.bf16 %v5058_v48 }
 0x59c   :  { %4637 = vmatprep.subr.bf16.mxu1 %v5145_v23 }
 0x59d   :  { %v4638_v42 = vpack.c.bf16 %v5055_v41, %v5054_v13  ;;  %v4647_v24 = vpack.c.bf16 %v5060_v34, %v5059_v40  ;;  %v2531_v34 = vunpack.c.h.bf16 %v3450_v27 }
 0x59e   :  { %v5063_v49 = vpop.permute.xlu0 %5062  ;;  %v5068_v56 = vpop.permute.xlu1 %5067 }
 0x59f   :  { %4639 = vmatpush3.bf16.msra.mxu1 %v4638_v42  ;;  %v5065_v54 = vunpack.i.h.bf16 %v5063_v49  ;;  %v5064_v55 = vunpack.i.l.bf16 %v5063_v49  ;;  %v5070_v60 = vunpack.i.h.bf16 %v5068_v56  ;;  %v5069_v61 = vunpack.i.l.bf16 %v5068_v56 }
 0x5a0   :  { %4640 = vmatprep.subr.bf16.mxu1 %v5145_v23 }
 0x5a1   :  { %v4650_v62 = vpack.c.bf16 %v5065_v54, %v5064_v55  ;;  %v4653_v63 = vpack.c.bf16 %v5070_v60, %v5069_v61 }
 0x5a2   :  { %4213 = vmatmul.mubr.msk.f32.vlgmr.msra.gmra.mrb[40].mxu1 %vm1937_vm0, %v3543_v47  ;;  %v5073_v31 = vpop.permute.xlu0 %5072  ;;  %v5078_v10 = vpop.permute.xlu1 %5077 }
 0x5a3   :  { %4642 = vmatpush3.bf16.msra.mxu1 %v4641_v26  ;;  %4223 = vmatprep.mubr.msk.f32.mxu1 %vm5146_vm8, %v5137_v21  ;;  %v5075_v37 = vunpack.i.h.bf16 %v5073_v31  ;;  %v5074_v2 = vunpack.i.l.bf16 %v5073_v31  ;;  %v5080_v4 = vunpack.i.h.bf16 %v5078_v10  ;;  %v5079_v5 = vunpack.i.l.bf16 %v5078_v10 }
 0x5a4   :  { %4643 = vmatprep.subr.bf16.mxu1 %v5145_v23 }
 0x5a5   :  { %v4656_v6 = vpack.c.bf16 %v5075_v37, %v5074_v2  ;;  %v4659_v14 = vpack.c.bf16 %v5080_v4, %v5079_v5 }
 0x5a6   :  { %v5083_v9 = vpop.permute.xlu0 %5082  ;;  %v5088_v50 = vpop.permute.xlu1 %5087 }
 0x5a7   :  { %4645 = vmatpush3.bf16.msra.mxu1 %v4644_v12  ;;  %v5085_v36 = vunpack.i.h.bf16 %v5083_v9  ;;  %v5084_v43 = vunpack.i.l.bf16 %v5083_v9  ;;  %v5090_v0 = vunpack.i.h.bf16 %v5088_v50  ;;  %v5089_v51 = vunpack.i.l.bf16 %v5088_v50 }
 0x5a8   :  { %4646 = vmatprep.subr.bf16.mxu1 %v5145_v23 }
 0x5a9   :  { %v4662_v15 = vpack.c.bf16 %v5085_v36, %v5084_v43  ;;  %v4665_v28 = vpack.c.bf16 %v5090_v0, %v5089_v51 }
 0x5aa   :  { %4224 = vmatmul.mubr.msk.f32.vlgmr.msra.gmra.mrb[40].mxu1 %vm1937_vm0, %v3542_v52  ;;  %v5093_v19 = vpop.permute.xlu0 %5092  ;;  %v5098_v1 = vpop.permute.xlu1 %5097 }
 0x5ab   :  { %4648 = vmatpush3.bf16.msra.mxu1 %v4647_v24  ;;  %4234 = vmatprep.mubr.msk.f32.mxu1 %vm5146_vm8, %v5137_v21  ;;  %v5095_v53 = vunpack.i.h.bf16 %v5093_v19  ;;  %v5094_v58 = vunpack.i.l.bf16 %v5093_v19  ;;  %v5100_v3 = vunpack.i.h.bf16 %v5098_v1  ;;  %v5099_v20 = vunpack.i.l.bf16 %v5098_v1  ;;  %v3454_v24 = vld [vmem:[%s5814_s5 + $0x20] sm:$0xf]  ;;  %s5152_s5 = smov 124  }
 0x5ac   :  { %4649 = vmatprep.subr.bf16.mxu1 %v5145_v23  ;;  %v2620_v55 = vunpack.c.l.bf16 %v3454_v24 }
 0x5ad   :  { %v4668_v16 = vpack.c.bf16 %v5095_v53, %v5094_v58  ;;  %v4671_v8 = vpack.c.bf16 %v5100_v3, %v5099_v20  ;;  %v3168_v20 = vld [vmem:[%s5810_s3 + $0x8] sm:$0xf] }
 0x5ae   :  { %v5103_v18 = vpop.permute.xlu0 %5102  ;;  %v5108_v22 = vpop.permute.xlu1 %5107 }
 0x5af   :  { %4651 = vmatpush3.bf16.msra.mxu1 %v4650_v62  ;;  %v5105_v25 = vunpack.i.h.bf16 %v5103_v18  ;;  %v5104_v26 = vunpack.i.l.bf16 %v5103_v18  ;;  %v5110_v12 = vunpack.i.h.bf16 %v5108_v22  ;;  %v5109_v32 = vunpack.i.l.bf16 %v5108_v22  ;;  %v3460_v22 = vld [vmem:[%s5815_s6 + $0x2] sm:$0x1] }
 0x5b0   :  { %4652 = vmatprep.subr.bf16.mxu1 %v5145_v23  ;;  %v2976_v27 = vunpack.c.l.bf16 %v3460_v22 }
 0x5b1   :  { %v4674_v33 = vpack.c.bf16 %v5105_v25, %v5104_v26  ;;  %v4677_v38 = vpack.c.bf16 %v5110_v12, %v5109_v32  ;;  %v3462_v32 = vld [vmem:[%s5815_s6 + $0x3] sm:$0x1] }
 0x5b2   :  { %4235 = vmatmul.mubr.msk.f32.vlgmr.msra.gmra.mrb[40].mxu1 %vm1937_vm0, %v2086_v46  ;;  %v5113_v35 = vpop.permute.xlu0 %5112  ;;  %v5118_v13 = vpop.permute.xlu1 %5117 }
 0x5b3   :  { %4654 = vmatpush3.bf16.msra.mxu1 %v4653_v63  ;;  %4245 = vmatprep.mubr.msk.f32.mxu1 %vm5146_vm8, %v5137_v21  ;;  %v5115_v39 = vunpack.i.h.bf16 %v5113_v35  ;;  %v5114_v41 = vunpack.i.l.bf16 %v5113_v35  ;;  %v5120_v59 = vunpack.i.h.bf16 %v5118_v13  ;;  %v5119_v42 = vunpack.i.l.bf16 %v5118_v13 }
 0x5b4   :  { %4655 = vmatprep.subr.bf16.mxu1 %v5145_v23 }
 0x5b5   :  { %v4680_v47 = vpack.c.bf16 %v5115_v39, %v5114_v41  ;;  %v4683_v40 = vpack.c.bf16 %v5120_v59, %v5119_v42 }
 0x5b6   :  { %v5123_v48 = vpop.permute.xlu0 %5122  ;;  %v2731_v56 = vpop.permute.xlu1 %2730 }
 0x5b7   :  { %4657 = vmatpush3.bf16.msra.mxu1 %v4656_v6  ;;  %v5125_v49 = vunpack.i.h.bf16 %v5123_v48  ;;  %v5124_v52 = vunpack.i.l.bf16 %v5123_v48 }
 0x5b8   :  { %4658 = vmatprep.subr.bf16.mxu1 %v5145_v23 }
 0x5b9   :  { %v4686_v54 = vpack.c.bf16 %v5125_v49, %v5124_v52 }
 0x5ba   :  { %4246 = vmatmul.mubr.msk.f32.vlgmr.msra.gmra.mrb[40].mxu1 %vm1937_vm0, %v2175_v11  ;;  %v2744_v30 = vpop.permute.xlu1 %2743  ;;  %v2736_v19 = vpop.permute.xlu0 %2735 }
 0x5bb   :  { %4660 = vmatpush3.bf16.msra.mxu1 %v4659_v14  ;;  %4256 = vmatprep.mubr.msk.f32.mxu1 %vm5146_vm8, %v5137_v21 }
 0x5bc   :  { %4661 = vmatprep.subr.bf16.mxu1 %v5145_v23 }
 0x5bf   :  { %4663 = vmatpush3.bf16.msra.mxu1 %v4662_v15 }
 0x5c0   :  { %4664 = vmatprep.subr.bf16.mxu1 %v5145_v23 }
 0x5c2   :  { %4257 = vmatmul.mubr.msk.f32.vlgmr.msra.gmra.mrb[40].mxu1 %vm1937_vm0, %v2264_v7 }
 0x5c3   :  { %4666 = vmatpush3.bf16.msra.mxu1 %v4665_v28  ;;  %4267 = vmatprep.mubr.msk.f32.mxu1 %vm5146_vm8, %v5137_v21 }
 0x5c4   :  { %4667 = vmatprep.subr.bf16.mxu1 %v5145_v23 }
 0x5c7   :  { %4669 = vmatpush3.bf16.msra.mxu1 %v4668_v16  ;;  %v3457_v16 = vld [vmem:[%s5815_s6 + $0x1] sm:$0x1] }
 0x5c8   :  { %4670 = vmatprep.subr.bf16.mxu1 %v5145_v23  ;;  %v2823_v18 = vunpack.c.l.bf16 %v3457_v16 }
 0x5ca   :  { %4268 = vmatmul.mubr.msk.f32.vlgmr.msra.gmra.mrb[40].mxu1 %vm1937_vm0, %v2353_v45 }
 0x5cb   :  { %4672 = vmatpush3.bf16.msra.mxu1 %v4671_v8  ;;  %4278 = vmatprep.mubr.msk.f32.mxu1 %vm5146_vm8, %v5137_v21  ;;  %v2819_v8 = vld [vmem:[%s5815_s6] sm:$0x1]  ;;  %s5155_s6 = smov 100  }
 0x5cc   :  { %4673 = vmatprep.subr.bf16.mxu1 %v5145_v23  ;;  %v2820_v25 = vunpack.c.l.bf16 %v2819_v8 }
 0x5cf   :  { %4675 = vmatpush3.bf16.msra.mxu1 %v4674_v33  ;;  %v3056_v33 = vunpack.c.l.bf16 %v3462_v32 }
 0x5d0   :  { %4676 = vmatprep.subr.bf16.mxu1 %v5145_v23 }
 0x5d2   :  { %4279 = vmatmul.mubr.msk.f32.vlgmr.msra.gmra.mrb[40].mxu1 %vm1937_vm0, %v2442_v17 }
 0x5d3   :  { %4678 = vmatpush3.bf16.msra.mxu1 %v4677_v38  ;;  %4289 = vmatprep.mubr.msk.f32.mxu1 %vm5146_vm8, %v5137_v21 }
 0x5d4   :  { %4679 = vmatprep.subr.bf16.mxu1 %v5145_v23 }
 0x5d7   :  { %4681 = vmatpush3.bf16.msra.mxu1 %v4680_v47 }
 0x5d8   :  { %4682 = vmatprep.subr.bf16.mxu1 %v5145_v23 }
 0x5da   :  { %4290 = vmatmul.mubr.msk.f32.vlgmr.msra.gmra.mrb[40].mxu1 %vm1937_vm0, %v2531_v34 }
 0x5db   :  { %4684 = vmatpush3.bf16.msra.mxu1 %v4683_v40  ;;  %4300 = vmatprep.mubr.msk.f32.mxu1 %vm5146_vm8, %v5137_v21 }
 0x5dc   :  { %4685 = vmatprep.subr.bf16.mxu1 %v5145_v23 }
 0x5df   :  { %4687 = vmatpush3.bf16.msra.mxu1 %v4686_v54 }
 0x5e0   :  { %4303 = vmatprep.subr.mxu1 %v5137_v21 }
 0x5e2   :  { %4301 = vmatmul.mubr.msk.f32.vlgmr.msra.gmra.mrb[40].mxu1 %vm1937_vm0, %v2620_v55 }
 0x5e3   :  { %4305 = vmatprep.mubr.msk.f32.mxu1 %vm5146_vm8, %v5137_v21  ;;  %4304 = vmatpush3.msra.mxu1 %v2744_v30 }
 0x5e4   :  { %4308 = vmatprep.subr.mxu1 %v5137_v21 }
 0x6b5   :  { %v2702_v60 = vpop.f32.mrb[40].mxu1 }
 0x6b6   :  { %v2707_v61 = vsel %vm301_vm2, %v2702_v60, 0.0  ;;  %v4302_v62 = vpop.f32.mrb[41].mxu1 }
 0x6b7   :  { %v2708_v23 = vrot.slane %v2707_v61, 4 }
 0x6b9   :  { %v2709_v31 = vadd.f32 %v2708_v23, %v2707_v61 }
 0x6bb   :  { %v2710_v46 = vrot.slane %v2709_v31, 2 }
 0x6bd   :  { %v2711_v63 = vadd.f32 %v2710_v46, %v2709_v31 }
 0x6bf   :  { %v2712_v37 = vrot.slane %v2711_v63, 1 }
 0x6c1   :  { %v2713_v2 = vadd.f32 %v2712_v37, %v2711_v63 }
 0x6c3   :  { %v2715_v10 = vmul.f32 0.125, %v2713_v2 }
 0x6c5   :  { %v2716_v4 = vsub.f32 %v2702_v60, %v2715_v10 }
 0x6c7   :  { %v2717_v5 = vmul.f32 %v2716_v4, %v2716_v4 }
 0x6c9   :  { %v2718_v6 = vsel %vm301_vm2, %v2717_v5, 0.0  ;;  %v3249_v5 = vld [vmem:[%s5816_s7] sm:$0x1] }
 0x6ca   :  { %v2719_v9 = vrot.slane %v2718_v6, 4 }
 0x6cc   :  { %v2720_v11 = vadd.f32 %v2719_v9, %v2718_v6  ;;  %v3250_v6 = vunpack.c.l.bf16 %v3249_v5 }
 0x6ce   :  { %v2721_v14 = vrot.slane %v2720_v11, 2 }
 0x6d0   :  { %v2722_v36 = vadd.f32 %v2721_v14, %v2720_v11 }
 0x6d2   :  { %v2723_v43 = vrot.slane %v2722_v36, 1 }
 0x6d4   :  { %v2724_v50 = vadd.f32 %v2723_v43, %v2722_v36 }
 0x6d6   :  { %v2725_v57 = vmul.f32 0.125, %v2724_v50 }
 0x6d8   :  { %v2726_v0 = vadd.f32 1e-05, %v2725_v57 }
 0x6da   :  { %5128 = vrsqrt.f32 %v2726_v0 }
 0x6e4   :  { %v5129_v51 = vpop.eup %5128 }
 0x6e5   :  { %v2728_v15 = vmul.f32 %v5129_v51, %v2716_v4 }
 0x6e7   :  { %v2733_v7 = vmul.f32 %v2731_v56, %v2728_v15 }
 0x6e9   :  { %v2738_v28 = vadd.f32 %v2736_v19, %v2733_v7 }
 0x6eb   :  { %vm2739_vm9 = vcmp.gt.f32.partialorder %v2738_v28, 0.0  ;;  %v2740_v53 = vmul.f32 0.2, %v2738_v28 }
 0x6ed   :  { %v2741_v58 = vsel %vm2739_vm9, %v2738_v28, %v2740_v53 }
 0x6ee   :  { %4306 = vmatmul.mubr.msk.f32.vlgmr.msra.gmra.mrb[42].mxu1 %vm301_vm2, %v2741_v58 }
 0x6ef   :  { %4310 = vmatprep.mubr.msk.f32.mxu1 %vm5146_vm8, %v5137_v21 }
 0x7c1   :  { %v2815_v1 = vpop.f32.mrb[42].mxu1 }
 0x7c2   :  { %2977 = vrot.lane.b32.xlu1 %v2815_v1, %s5147_s8  ;;  %2825 = vrot.lane.b32.xlu0 %v2815_v1, %s5152_s5  ;;  %v4307_v3 = vpop.f32.mrb[43].mxu1 }
 0x7c6   :  { %3057 = vrot.lane.b32.xlu0 %v2815_v1, %s5153_s26  ;;  %3157 = vrot.lane.b32.xlu1 %v5651_v44, %s5148_s15 }
 0x7ca   :  { %3161 = vrot.lane.b32.xlu0 %v5656_v29, %s5148_s15  ;;  %3170 = vrot.lane.b32.xlu1 %v3168_v20, %s5154_s28 }
 0x7ce   :  { %3351 = vrot.lane.b32.xlu0 %v5651_v44, %s5155_s6  ;;  %3355 = vrot.lane.b32.xlu1 %v5656_v29, %s5155_s6 }
 0x834   :  { %v2826_v45 = vpop.permute.xlu0 %2825  ;;  %v2978_v26 = vpop.permute.xlu1 %2977 }
 0x835   :  { %4309 = vmatpush3.msra.mxu1 %v2826_v45 }
 0x836   :  { %4311 = vmatmul.mubr.msk.f32.vlgmr.msra.gmra.mrb[44].mxu1 %vm301_vm2, %v2823_v18  ;;  %4313 = vmatprep.subr.mxu1 %v5137_v21 }
 0x837   :  { %4314 = vmatpush3.msra.mxu1 %v2815_v1  ;;  %4315 = vmatprep.mubr.msk.f32.mxu1 %vm5146_vm8, %v5137_v21 }
 0x838   :  { %4318 = vmatprep.subr.mxu1 %v5137_v21  ;;  %v3058_v12 = vpop.permute.xlu0 %3057  ;;  %v3158_v35 = vpop.permute.xlu1 %3157 }
 0x83c   :  { %v3171_v17 = vpop.permute.xlu1 %3170  ;;  %v3162_v63 = vpop.permute.xlu0 %3161 }
 0x83e   :  { %4316 = vmatmul.mubr.msk.f32.vlgmr.msra.gmra.mrb[44].mxu1 %vm301_vm2, %v2820_v25 }
 0x83f   :  { %4319 = vmatpush3.msra.mxu1 %v2978_v26  ;;  %4320 = vmatprep.mubr.msk.f32.mxu1 %vm5146_vm8, %v5137_v21 }
 0x840   :  { %4323 = vmatprep.subr.mxu1 %v5137_v21  ;;  %v3352_v8 = vpop.permute.xlu0 %3351  ;;  %v3356_v26 = vpop.permute.xlu1 %3355 }
 0x846   :  { %4321 = vmatmul.mubr.msk.f32.vlgmr.msra.gmra.mrb[44].mxu1 %vm301_vm2, %v2976_v27 }
 0x847   :  { %4324 = vmatpush3.msra.mxu1 %v3058_v12  ;;  %4325 = vmatprep.mubr.msk.f32.mxu1 %vm5146_vm8, %v5137_v21 }
 0x848   :  { %4328 = vmatprep.subr.mxu1 %v5137_v21 }
 0x84e   :  { %4326 = vmatmul.mubr.msk.f32.vlgmr.msra.gmra.mrb[44].mxu1 %vm301_vm2, %v3056_v33 }
 0x84f   :  { %4330 = vmatprep.mubr.msk.f32.mxu1 %vm5146_vm8, %v5137_v21  ;;  %4329 = vmatpush3.msk.msra.mxu1 %vm3176_vm10, %v3171_v17 }
 0x850   :  { %4333 = vmatprep.subr.mxu1 %v5137_v21 }
 0x921   :  { %v3129_v38 = vpop.f32.mrb[44].mxu1 }
 0x922   :  { %v3135_v39 = vsel %vm3134_vm11, %v3129_v38, 0.0  ;;  %v4327_v41 = vpop.f32.mrb[45].mxu1 }
 0x923   :  { %v3136_v13 = vrot.slane %v3135_v39, 4 }
 0x925   :  { %v3137_v59 = vadd.f32 %v3136_v13, %v3135_v39 }
 0x927   :  { %v3138_v42 = vrot.slane %v3137_v59, 2 }
 0x929   :  { %v3139_v47 = vadd.f32 %v3138_v42, %v3137_v59 }
 0x92b   :  { %v3140_v48 = vrot.slane %v3139_v47, 1 }
 0x92d   :  { %v3141_v34 = vadd.f32 %v3140_v48, %v3139_v47 }
 0x92f   :  { %v3143_v40 = vmul.f32 0.5, %v3141_v34 }
 0x931   :  { %v3144_v49 = vsub.f32 %v3129_v38, %v3143_v40 }
 0x933   :  { %v3145_v52 = vmul.f32 %v3144_v49, %v3144_v49 }
 0x935   :  { %v3146_v24 = vsel %vm3134_vm11, %v3145_v52, 0.0 }
 0x936   :  { %v3147_v54 = vrot.slane %v3146_v24, 4 }
 0x938   :  { %v3148_v55 = vadd.f32 %v3147_v54, %v3146_v24 }
 0x93a   :  { %v3149_v56 = vrot.slane %v3148_v55, 2 }
 0x93c   :  { %v3150_v30 = vadd.f32 %v3149_v56, %v3148_v55 }
 0x93e   :  { %v3151_v60 = vrot.slane %v3150_v30, 1 }
 0x940   :  { %v3152_v61 = vadd.f32 %v3151_v60, %v3150_v30 }
 0x942   :  { %v3153_v62 = vmul.f32 0.5, %v3152_v61 }
 0x944   :  { %v3154_v23 = vadd.f32 1e-05, %v3153_v62 }
 0x946   :  { %5130 = vrsqrt.f32 %v3154_v23 }
 0x950   :  { %v5131_v31 = vpop.eup %5130 }
 0x951   :  { %v3156_v46 = vmul.f32 %v5131_v31, %v3144_v49 }
 0x953   :  { %v3160_v37 = vmul.f32 %v3158_v35, %v3156_v46 }
 0x955   :  { %v3164_v2 = vadd.f32 %v3162_v63, %v3160_v37 }
 0x957   :  { %vm3165_vm2 = vcmp.gt.f32.partialorder %v3164_v2, 0.0  ;;  %v3166_v10 = vmul.f32 0.2, %v3164_v2 }
 0x959   :  { %v3167_v4 = vsel %vm3165_vm2, %v3164_v2, %v3166_v10 }
 0x95a   :  { %4331 = vmatmul.mubr.msk.f32.vlgmr.msra.gmra.mrb[46].mxu1 %vm3172_vm12, %v3167_v4 }
 0x95b   :  { %4335 = vmatprep.mubr.msk.f32.mxu1 %vm5146_vm8, %v5137_v21 }
 0xa2d   :  { %v3245_v9 = vpop.f32.mrb[46].mxu1 }
 0xa2e   :  { %v4332_v11 = vpop.f32.mrb[47].mxu1  ;;  %4334 = vmatpush3.msk.msra.mxu1 %vm3255_vm13, %v3245_v9 }
 0xa2f   :  { %4336 = vmatmul.mubr.msk.f32.vlgmr.msra.gmra.mrb[48].mxu1 %vm3251_vm14, %v3250_v6 }
 0xb02   :  { %v3325_v14 = vpop.f32.mrb[48].mxu1 }
 0xb03   :  { %v3330_v21 = vsel %vm3329_vm15, %v3325_v14, 0.0  ;;  %v4337_v36 = vpop.f32.mrb[49].mxu1 }
 0xb04   :  { %v3331_v43 = vrot.slane %v3330_v21, 4 }
 0xb06   :  { %v3332_v44 = vadd.f32 %v3331_v43, %v3330_v21 }
 0xb08   :  { %v3333_v50 = vrot.slane %v3332_v44, 2 }
 0xb0a   :  { %v3334_v29 = vadd.f32 %v3333_v50, %v3332_v44 }
 0xb0c   :  { %v3335_v57 = vrot.slane %v3334_v29, 1 }
 0xb0e   :  { %v3336_v0 = vadd.f32 %v3335_v57, %v3334_v29 }
 0xb10   :  { %v3337_v51 = vmul.f32 0.5, %v3336_v0 }
 0xb12   :  { %v3338_v15 = vsub.f32 %v3325_v14, %v3337_v51 }
 0xb14   :  { %v3339_v19 = vmul.f32 %v3338_v15, %v3338_v15 }
 0xb16   :  { %v3340_v7 = vsel %vm3329_vm15, %v3339_v19, 0.0 }
 0xb17   :  { %v3341_v28 = vrot.slane %v3340_v7, 4 }
 0xb19   :  { %v3342_v53 = vadd.f32 %v3341_v28, %v3340_v7 }
 0xb1b   :  { %v3343_v58 = vrot.slane %v3342_v53, 2 }
 0xb1d   :  { %v3344_v1 = vadd.f32 %v3343_v58, %v3342_v53 }
 0xb1f   :  { %v3345_v3 = vrot.slane %v3344_v1, 1 }
 0xb21   :  { %v3346_v20 = vadd.f32 %v3345_v3, %v3344_v1 }
 0xb23   :  { %v3347_v16 = vmul.f32 0.5, %v3346_v20 }
 0xb25   :  { %v3348_v18 = vadd.f32 1e-05, %v3347_v16 }
 0xb27   :  { %5132 = vrsqrt.f32 %v3348_v18 }
 0xb31   :  { %v5133_v45 = vpop.eup %5132 }
 0xb32   :  { %v3350_v25 = vmul.f32 %v5133_v45, %v3338_v15 }
 0xb34   :  { %v3354_v22 = vmul.f32 %v3352_v8, %v3350_v25 }
 0xb36   :  { %v3358_v27 = vadd.f32 %v3356_v26, %v3354_v22 }
 0xb38   :  { %v3359_v12 = vmul.f32 0.5, %v3358_v27 }
 0xb3a   :  { %5134 = vtanh.f32 %v3359_v12 }
 0xb44   :  { %v5135_v32 = vpop.eup %5134 }
 0xb45   :  { %v3361_v33 = vadd.f32 1.0, %v5135_v32 }
 0xb47   :  { %v3362_v35 = vmul.f32 0.5, %v3361_v33 }
 0xb49   :  { %3363 = vst.msk [vmem:[%s5817_s9] sm:$0x3] %vm3329_vm15, %v3362_v35 }

</bundles_post_ra>
